<compile_context>
chip_gen: v6e
topology: v6e:2x2x1
jax: 0.10.0
libtpu: 0.0.40
codegen_flags: <defaults>
</compile_context>

<pallas_src>
import jax
import jax.numpy as jnp
from jax import lax
from jax.experimental import pallas as pl
from jax.experimental.pallas import tpu as pltpu

# Masked-conv "B" taps kept by the mask (kernel-index space, kh=kw=3, center=(1,1)).
_MASK_B_TAPS = ((0, 0), (0, 1), (0, 2), (1, 0), (1, 1))
_LANE = 128


def _round_up(n, m):
    return ((n + m - 1) // m) * m


def _pick_tile_h(H, W):
    """Largest divisor of H with tile_h*W <= 1024 rows per matmul, preferring
    at least 2 row blocks so the DMA pipeline has depth."""
    best = 1
    for th in range(1, H + 1):
        if H % th == 0 and th * W <= 1024 and (th < H or H == 1):
            best = th
    return best


def _residual_block_kernel(x_ref, xh_ref, w1_ref, w2_ref, w3_ref, o_ref, pad_ref):
    # x_ref : (1, TH, W, C)  bf16   current row block
    # xh_ref: (1, 1,  W, C)  bf16   row above the block (top halo; garbage row 0 when i==0)
    # w1_ref: (C, Cm)        bf16
    # w2_ref: (5*Cm, Cm)     bf16   stacked mask-B tap weights
    # w3_ref: (Cm, C)        bf16
    # o_ref : (1, TH, W, C)  f32
    # pad_ref: (TH+1, W+2, Cm) bf16 scratch: zero-bordered h1 (row 0 = halo row)
    _, TH, W, C = x_ref.shape
    Cm = w1_ref.shape[1]
    n_taps = len(_MASK_B_TAPS)

    # Left/right zero-padding columns of the h1 scratch (never written below,
    # so refresh them every step - scratch memory is uninitialized).
    zero_col = jnp.zeros((TH + 1, 1, Cm), dtype=pad_ref.dtype)
    pad_ref[:, 0:1, :] = zero_col
    pad_ref[:, W + 1:W + 2, :] = zero_col

    # ---- 1x1 conv (C -> Cm) + ReLU for the row block, written into the
    #      interior of the zero-bordered scratch.
    x2d = x_ref[0].reshape(TH * W, C)                                   # bf16
    h1 = jnp.maximum(
        jnp.dot(x2d, w1_ref[...], preferred_element_type=jnp.float32), 0.0)
    pad_ref[1:TH + 1, 1:W + 1, :] = h1.reshape(TH, W, Cm).astype(pad_ref.dtype)

    # ---- same 1x1 conv for the 1-row top halo.  For the first row block of
    #      an image the halo is the conv's zero padding (no bias => relu(0)=0).
    xh2d = xh_ref[0, 0]                                                 # (W, C)
    h1h = jnp.maximum(
        jnp.dot(xh2d, w1_ref[...], preferred_element_type=jnp.float32), 0.0)
    not_first = (pl.program_id(1) > 0).astype(jnp.float32)
    h1h = h1h * not_first
    pad_ref[0:1, 1:W + 1, :] = h1h.reshape(1, W, Cm).astype(pad_ref.dtype)

    # ---- masked 3x3 conv (type 'B') as ONE fused matmul with K = 5*Cm.
    taps = [pad_ref[ky:ky + TH, kx:kx + W, :] for (ky, kx) in _MASK_B_TAPS]
    stacked = jnp.concatenate(taps, axis=-1).reshape(TH * W, n_taps * Cm)
    h2 = jnp.maximum(
        jnp.dot(stacked, w2_ref[...], preferred_element_type=jnp.float32), 0.0)

    # ---- 1x1 conv (Cm -> C) + ReLU + residual (f32).
    h3 = jnp.maximum(
        jnp.dot(h2.astype(jnp.bfloat16), w3_ref[...],
                preferred_element_type=jnp.float32), 0.0)
    out = h3 + x2d.astype(jnp.float32)
    o_ref[0] = out.reshape(TH, W, C).astype(o_ref.dtype)


def residual_block_pallas_nhwc(x_nhwc, w1_torch, w2_torch, w3_torch, *, tile_h=None):
    """NHWC-in / NHWC-out Pallas ResidualBlock. w*_torch are PyTorch OIHW weights."""
    B, H, W, C = x_nhwc.shape
    Cm = C // 2
    Cp = _round_up(C, _LANE)       # lane-dense channel count
    Cmp = _round_up(Cm, _LANE)
    n_taps = len(_MASK_B_TAPS)

    if tile_h is None:
        tile_h = _pick_tile_h(H, W)
    assert H % tile_h == 0, "tile_h must divide H"
    n_h = H // tile_h

    # Channel-pad activations to a multiple of 128 and cast to bf16.
    x_p = jnp.pad(x_nhwc.astype(jnp.float32),
                  ((0, 0), (0, 0), (0, 0), (0, Cp - C))).astype(jnp.bfloat16)

    # PyTorch conv weights are (out, in, kh, kw).  Build lane-padded bf16
    # matmul matrices (in, out); stack the 5 mask-B taps along K for one dot.
    w1 = jnp.transpose(w1_torch[:, :, 0, 0], (1, 0))                    # (C, Cm)
    w1 = jnp.pad(w1, ((0, Cp - C), (0, Cmp - Cm))).astype(jnp.bfloat16)
    w3 = jnp.transpose(w3_torch[:, :, 0, 0], (1, 0))                    # (Cm, C)
    w3 = jnp.pad(w3, ((0, Cmp - Cm), (0, Cp - C))).astype(jnp.bfloat16)
    w2_taps = [jnp.pad(jnp.transpose(w2_torch[:, :, ky, kx], (1, 0)),
                       ((0, Cmp - Cm), (0, Cmp - Cm)))
               for (ky, kx) in _MASK_B_TAPS]
    w2 = jnp.concatenate(w2_taps, axis=0).astype(jnp.bfloat16)          # (5*Cmp, Cmp)

    out_p = pl.pallas_call(
        _residual_block_kernel,
        out_shape=jax.ShapeDtypeStruct((B, H, W, Cp), jnp.float32),
        grid_spec=pltpu.PrefetchScalarGridSpec(
            num_scalar_prefetch=0,
            grid=(B, n_h),
            in_specs=[
                # row block
                pl.BlockSpec((1, tile_h, W, Cp), lambda b, i: (b, i, 0, 0)),
                # 1-row top halo (same array; row i*tile_h - 1, clamped at 0 and
                # zeroed inside the kernel for the first block)
                pl.BlockSpec((1, 1, W, Cp),
                             lambda b, i: (b, jnp.maximum(i * tile_h - 1, 0), 0, 0)),
                pl.BlockSpec((Cp, Cmp), lambda b, i: (0, 0)),
                pl.BlockSpec((n_taps * Cmp, Cmp), lambda b, i: (0, 0)),
                pl.BlockSpec((Cmp, Cp), lambda b, i: (0, 0)),
            ],
            out_specs=pl.BlockSpec((1, tile_h, W, Cp), lambda b, i: (b, i, 0, 0)),
            scratch_shapes=[pltpu.VMEM((tile_h + 1, W + 2, Cmp), jnp.bfloat16)],
        ),
        compiler_params=pltpu.CompilerParams(
            dimension_semantics=("parallel", "parallel"),
            vmem_limit_bytes=32 * 1024 * 1024,   # fits v5e/v6e/v7x scoped VMEM
        ),
    )(x_p, x_p, w1, w2, w3)

    return out_p[..., :C]


def residual_block_pallas(x_nchw, w1_torch, w2_torch, w3_torch, *, tile_h=None):
    """NCHW interface matching the PyTorch module.  The two transposes only
    exist to honor the NCHW spec; NHWC callers should use
    residual_block_pallas_nhwc directly and skip them."""
    x_nhwc = jnp.transpose(x_nchw, (0, 2, 3, 1))
    out_nhwc = residual_block_pallas_nhwc(x_nhwc, w1_torch, w2_torch, w3_torch,
                                          tile_h=tile_h)
    return jnp.transpose(out_nhwc, (0, 3, 1, 2))


# ----------------------------- reference ------------------------------------
def _mask_b(kh, kw):
    m = jnp.zeros((kh, kw), dtype=jnp.float32)
    yc, xc = kh // 2, kw // 2
    m = m.at[:yc, :].set(1.0)
    m = m.at[yc, : xc + 1].set(1.0)   # type 'B': center kept
    return m


def _reference(x_nchw, w1_torch, w2_torch, w3_torch, quantize=False):
    """Pure-JAX reference mirroring the PyTorch module (NHWC internally).

    quantize=True rounds inputs/weights/intermediates to bf16 exactly where the
    Pallas kernel does, so it matches the kernel to f32-accumulation precision.
    """
    if quantize:
        q = lambda a: a.astype(jnp.bfloat16).astype(jnp.float32)
    else:
        q = lambda a: a.astype(jnp.float32)

    x = q(jnp.transpose(x_nchw, (0, 2, 3, 1)))                     # NHWC
    dn = ("NHWC", "HWIO", "NHWC")

    def conv(h, w_oihw):
        w_hwio = jnp.transpose(q(w_oihw), (2, 3, 1, 0))
        return lax.conv_general_dilated(h, w_hwio, (1, 1), "SAME",
                                        dimension_numbers=dn,
                                        precision=lax.Precision.HIGHEST)

    h = q(jax.nn.relu(conv(x, w1_torch)))
    mask = _mask_b(3, 3)[None, None, :, :]
    h = q(jax.nn.relu(conv(h, w2_torch * mask)))
    h = jax.nn.relu(conv(h, w3_torch))
    out = h + x
    return jnp.transpose(out, (0, 3, 1, 2))


if __name__ == "__main__":
    B, C, H, W = 2, 4, 16, 16
    Cm = C // 2

    key = jax.random.PRNGKey(0)
    kx, k1, k2, k3 = jax.random.split(key, 4)
    x = jax.random.normal(kx, (B, C, H, W), dtype=jnp.float32)
    # Deterministic synthetic weights in PyTorch layout (out, in, kh, kw).
    w1 = jax.random.normal(k1, (Cm, C, 1, 1), dtype=jnp.float32) * 0.3
    w2 = jax.random.normal(k2, (Cm, Cm, 3, 3), dtype=jnp.float32) * 0.3
    w3 = jax.random.normal(k3, (C, Cm, 1, 1), dtype=jnp.float32) * 0.3

    # tile_h=8 -> grid=(2, 2): exercises the row-block halo path.
    out = residual_block_pallas(x, w1, w2, w3, tile_h=8)
    out = jax.block_until_ready(out)
    assert out.shape == (B, C, H, W)

    # Exact-math check vs a reference that quantizes to bf16 at the same points
    # as the kernel (remaining delta is just f32 accumulation order).
    ref_q = _reference(x, w1, w2, w3, quantize=True)
    assert jnp.allclose(out, ref_q, atol=1e-3, rtol=1e-3), \
        "mismatch vs bf16-quantized reference"

    # Coarse check vs the full-f32 module semantics (bf16 quantization error only).
    ref_f32 = _reference(x, w1, w2, w3, quantize=False)
    assert jnp.allclose(out, ref_f32, atol=5e-2, rtol=5e-2), \
        "mismatch vs f32 reference"

    print("KERNEL_OK")
</pallas_src>

<mosaic_0001>
module attributes {stable_mosaic.version = 11 : i64} {
  func.func @_residual_block_kernel(%arg0: i32, %arg1: i32, %arg2: memref<1x8x16x128xbf16, #tpu.memory_space<vmem>>, %arg3: memref<1x1x16x128xbf16, #tpu.memory_space<vmem>>, %arg4: memref<128x128xbf16, #tpu.memory_space<vmem>>, %arg5: memref<640x128xbf16, #tpu.memory_space<vmem>>, %arg6: memref<128x128xbf16, #tpu.memory_space<vmem>>, %arg7: memref<1x8x16x128xf32, #tpu.memory_space<vmem>>, %arg8: memref<9x18x128xbf16, #tpu.memory_space<vmem>>) attributes {dimension_semantics = [#tpu.dimension_semantics<parallel>, #tpu.dimension_semantics<parallel>], iteration_bounds = array<i64: 2, 2>, scalar_prefetch = 0 : i64, scratch_operands = 1 : i64, tpu.core_type = #tpu.core_type<tc>, window_params = [{transform_indices = @transform_0, window_bounds = array<i64: 1, 8, 16, 128>}, {transform_indices = @transform_1, window_bounds = array<i64: 1, 1, 16, 128>}, {pipeline_mode = #tpu.pipeline_mode<synchronous>, transform_indices = @transform_2, window_bounds = array<i64: 128, 128>}, {pipeline_mode = #tpu.pipeline_mode<synchronous>, transform_indices = @transform_3, window_bounds = array<i64: 640, 128>}, {pipeline_mode = #tpu.pipeline_mode<synchronous>, transform_indices = @transform_4, window_bounds = array<i64: 128, 128>}, {transform_indices = @transform_5, window_bounds = array<i64: 1, 8, 16, 128>}]} {
    %cst = arith.constant 0.000000e+00 : bf16
    %0 = vector.broadcast %cst : bf16 to vector<9x1x128xbf16>
    %c0 = arith.constant 0 : index
    %c0_0 = arith.constant 0 : index
    %c0_1 = arith.constant 0 : index
    %1 = vector.load %arg8[%c0, %c0_0, %c0_1] : memref<9x18x128xbf16, #tpu.memory_space<vmem>>, vector<9x1x128xbf16>
    tpu.vector_store %arg8[%c0, %c0_0, %c0_1], %0 {strides = array<i32>} : memref<9x18x128xbf16, #tpu.memory_space<vmem>>, vector<9x1x128xbf16>,
    %c0_2 = arith.constant 0 : index
    %c17 = arith.constant 17 : index
    %c0_3 = arith.constant 0 : index
    %2 = vector.load %arg8[%c0_2, %c17, %c0_3] : memref<9x18x128xbf16, #tpu.memory_space<vmem>>, vector<9x1x128xbf16>
    tpu.vector_store %arg8[%c0_2, %c17, %c0_3], %0 {strides = array<i32>} : memref<9x18x128xbf16, #tpu.memory_space<vmem>>, vector<9x1x128xbf16>,
    %c0_4 = arith.constant 0 : index
    %c0_5 = arith.constant 0 : index
    %c0_6 = arith.constant 0 : index
    %c0_7 = arith.constant 0 : index
    %3 = vector.load %arg2[%c0_4, %c0_5, %c0_6, %c0_7] : memref<1x8x16x128xbf16, #tpu.memory_space<vmem>>, vector<1x8x16x128xbf16>
    %4 = vector.shape_cast %3 : vector<1x8x16x128xbf16> to vector<8x16x128xbf16>
    %5 = vector.shape_cast %4 : vector<8x16x128xbf16> to vector<128x128xbf16>
    %c0_8 = arith.constant 0 : index
    %c0_9 = arith.constant 0 : index
    %6 = vector.load %arg4[%c0_8, %c0_9] : memref<128x128xbf16, #tpu.memory_space<vmem>>, vector<128x128xbf16>
    %cst_10 = arith.constant dense<0.000000e+00> : vector<128x128xf32>
    %7 = tpu.matmul %5, %6, %cst_10 {dimension_numbers = #tpu.dot_dimension_numbers<[1], [0], [0], [1], [0, 0, 1, 1], [], []>} : vector<128x128xbf16>, vector<128x128xbf16>, vector<128x128xf32> -> vector<128x128xf32>
    %cst_11 = arith.constant 0.000000e+00 : f32
    %8 = vector.broadcast %cst_11 : f32 to vector<128x128xf32>
    %9 = arith.maximumf %7, %8 : vector<128x128xf32>
    %10 = vector.shape_cast %9 : vector<128x128xf32> to vector<8x16x128xf32>
    %11 = arith.truncf %10 : vector<8x16x128xf32> to vector<8x16x128xbf16>
    %c1 = arith.constant 1 : index
    %c1_12 = arith.constant 1 : index
    %c0_13 = arith.constant 0 : index
    %12 = vector.load %arg8[%c1, %c1_12, %c0_13] : memref<9x18x128xbf16, #tpu.memory_space<vmem>>, vector<8x16x128xbf16>
    tpu.vector_store %arg8[%c1, %c1_12, %c0_13], %11 {strides = array<i32>} : memref<9x18x128xbf16, #tpu.memory_space<vmem>>, vector<8x16x128xbf16>,
    %c0_14 = arith.constant 0 : index
    %c0_15 = arith.constant 0 : index
    %c0_16 = arith.constant 0 : index
    %c0_17 = arith.constant 0 : index
    %13 = vector.load %arg3[%c0_14, %c0_15, %c0_16, %c0_17] : memref<1x1x16x128xbf16, #tpu.memory_space<vmem>>, vector<1x1x16x128xbf16>
    %14 = vector.shape_cast %13 : vector<1x1x16x128xbf16> to vector<16x128xbf16>
    %c0_18 = arith.constant 0 : index
    %c0_19 = arith.constant 0 : index
    %15 = vector.load %arg4[%c0_18, %c0_19] : memref<128x128xbf16, #tpu.memory_space<vmem>>, vector<128x128xbf16>
    %cst_20 = arith.constant dense<0.000000e+00> : vector<16x128xf32>
    %16 = tpu.matmul %14, %15, %cst_20 {dimension_numbers = #tpu.dot_dimension_numbers<[1], [0], [0], [1], [0, 0, 1, 1], [], []>} : vector<16x128xbf16>, vector<128x128xbf16>, vector<16x128xf32> -> vector<16x128xf32>
    %cst_21 = arith.constant 0.000000e+00 : f32
    %17 = vector.broadcast %cst_21 : f32 to vector<16x128xf32>
    %18 = arith.maximumf %16, %17 : vector<16x128xf32>
    %c0_i32 = arith.constant 0 : i32
    %19 = arith.cmpi sgt, %arg1, %c0_i32 : i32
    %20 = arith.extui %19 : i1 to i32
    %21 = arith.sitofp %20 : i32 to f32
    %22 = vector.broadcast %21 : f32 to vector<16x128xf32>
    %23 = arith.mulf %18, %22 : vector<16x128xf32>
    %24 = vector.shape_cast %23 : vector<16x128xf32> to vector<1x16x128xf32>
    %25 = arith.truncf %24 : vector<1x16x128xf32> to vector<1x16x128xbf16>
    %c0_22 = arith.constant 0 : index
    %c1_23 = arith.constant 1 : index
    %c0_24 = arith.constant 0 : index
    %26 = vector.load %arg8[%c0_22, %c1_23, %c0_24] : memref<9x18x128xbf16, #tpu.memory_space<vmem>>, vector<1x16x128xbf16>
    tpu.vector_store %arg8[%c0_22, %c1_23, %c0_24], %25 {strides = array<i32>} : memref<9x18x128xbf16, #tpu.memory_space<vmem>>, vector<1x16x128xbf16>,
    %c0_25 = arith.constant 0 : index
    %c0_26 = arith.constant 0 : index
    %c0_27 = arith.constant 0 : index
    %27 = vector.load %arg8[%c0_25, %c0_26, %c0_27] : memref<9x18x128xbf16, #tpu.memory_space<vmem>>, vector<8x16x128xbf16>
    %c0_28 = arith.constant 0 : index
    %c1_29 = arith.constant 1 : index
    %c0_30 = arith.constant 0 : index
    %28 = vector.load %arg8[%c0_28, %c1_29, %c0_30] : memref<9x18x128xbf16, #tpu.memory_space<vmem>>, vector<8x16x128xbf16>
    %c0_31 = arith.constant 0 : index
    %c2 = arith.constant 2 : index
    %c0_32 = arith.constant 0 : index
    %29 = vector.load %arg8[%c0_31, %c2, %c0_32] : memref<9x18x128xbf16, #tpu.memory_space<vmem>>, vector<8x16x128xbf16>
    %c1_33 = arith.constant 1 : index
    %c0_34 = arith.constant 0 : index
    %c0_35 = arith.constant 0 : index
    %30 = vector.load %arg8[%c1_33, %c0_34, %c0_35] : memref<9x18x128xbf16, #tpu.memory_space<vmem>>, vector<8x16x128xbf16>
    %c1_36 = arith.constant 1 : index
    %c1_37 = arith.constant 1 : index
    %c0_38 = arith.constant 0 : index
    %31 = vector.load %arg8[%c1_36, %c1_37, %c0_38] : memref<9x18x128xbf16, #tpu.memory_space<vmem>>, vector<8x16x128xbf16>
    %32 = tpu.concatenate %27, %28, %29, %30, %31 in 2 : vector<8x16x128xbf16>, vector<8x16x128xbf16>, vector<8x16x128xbf16>, vector<8x16x128xbf16>, vector<8x16x128xbf16> -> vector<8x16x640xbf16>
    %33 = vector.shape_cast %32 : vector<8x16x640xbf16> to vector<128x640xbf16>
    %c0_39 = arith.constant 0 : index
    %c0_40 = arith.constant 0 : index
    %34 = vector.load %arg5[%c0_39, %c0_40] : memref<640x128xbf16, #tpu.memory_space<vmem>>, vector<640x128xbf16>
    %cst_41 = arith.constant dense<0.000000e+00> : vector<128x128xf32>
    %35 = tpu.matmul %33, %34, %cst_41 {dimension_numbers = #tpu.dot_dimension_numbers<[1], [0], [0], [1], [0, 0, 1, 1], [], []>} : vector<128x640xbf16>, vector<640x128xbf16>, vector<128x128xf32> -> vector<128x128xf32>
    %cst_42 = arith.constant 0.000000e+00 : f32
    %36 = vector.broadcast %cst_42 : f32 to vector<128x128xf32>
    %37 = arith.maximumf %35, %36 : vector<128x128xf32>
    %38 = arith.truncf %37 : vector<128x128xf32> to vector<128x128xbf16>
    %c0_43 = arith.constant 0 : index
    %c0_44 = arith.constant 0 : index
    %39 = vector.load %arg6[%c0_43, %c0_44] : memref<128x128xbf16, #tpu.memory_space<vmem>>, vector<128x128xbf16>
    %cst_45 = arith.constant dense<0.000000e+00> : vector<128x128xf32>
    %40 = tpu.matmul %38, %39, %cst_45 {dimension_numbers = #tpu.dot_dimension_numbers<[1], [0], [0], [1], [0, 0, 1, 1], [], []>} : vector<128x128xbf16>, vector<128x128xbf16>, vector<128x128xf32> -> vector<128x128xf32>
    %cst_46 = arith.constant 0.000000e+00 : f32
    %41 = vector.broadcast %cst_46 : f32 to vector<128x128xf32>
    %42 = arith.maximumf %40, %41 : vector<128x128xf32>
    %43 = arith.extf %5 : vector<128x128xbf16> to vector<128x128xf32>
    %44 = arith.addf %42, %43 : vector<128x128xf32>
    %45 = vector.shape_cast %44 : vector<128x128xf32> to vector<8x16x128xf32>
    %c0_47 = arith.constant 0 : index
    %c0_48 = arith.constant 0 : index
    %c0_49 = arith.constant 0 : index
    %c0_50 = arith.constant 0 : index
    %46 = vector.load %arg7[%c0_47, %c0_48, %c0_49, %c0_50] : memref<1x8x16x128xf32, #tpu.memory_space<vmem>>, vector<1x8x16x128xf32>
    %47 = vector.shape_cast %46 : vector<1x8x16x128xf32> to vector<8x16x128xf32>
    %48 = vector.shape_cast %45 : vector<8x16x128xf32> to vector<1x8x16x128xf32>
    tpu.vector_store %arg7[%c0_47, %c0_48, %c0_49, %c0_50], %48 {strides = array<i32>} : memref<1x8x16x128xf32, #tpu.memory_space<vmem>>, vector<1x8x16x128xf32>,
    return
  }
  func.func @transform_0(%arg0: i32, %arg1: i32) -> (i32, i32, i32, i32) {
    %c0_i32 = arith.constant 0 : i32
    %c0_i32_0 = arith.constant 0 : i32
    %c0_i32_1 = arith.constant 0 : i32
    return %arg0, %arg1, %c0_i32, %c0_i32_0 : i32, i32, i32, i32
  }
  func.func @transform_1(%arg0: i32, %arg1: i32) -> (i32, i32, i32, i32) {
    %c8_i32 = arith.constant 8 : i32
    %0 = arith.muli %arg1, %c8_i32 : i32
    %c1_i32 = arith.constant 1 : i32
    %1 = arith.subi %0, %c1_i32 : i32
    %c0_i32 = arith.constant 0 : i32
    %2 = arith.maxsi %1, %c0_i32 : i32
    %c0_i32_0 = arith.constant 0 : i32
    %c0_i32_1 = arith.constant 0 : i32
    %c0_i32_2 = arith.constant 0 : i32
    return %arg0, %2, %c0_i32_0, %c0_i32_1 : i32, i32, i32, i32
  }
  func.func @transform_2(%arg0: i32, %arg1: i32) -> (i32, i32) {
    %c0_i32 = arith.constant 0 : i32
    %c0_i32_0 = arith.constant 0 : i32
    %c0_i32_1 = arith.constant 0 : i32
    return %c0_i32, %c0_i32_0 : i32, i32
  }
  func.func @transform_3(%arg0: i32, %arg1: i32) -> (i32, i32) {
    %c0_i32 = arith.constant 0 : i32
    %c0_i32_0 = arith.constant 0 : i32
    %c0_i32_1 = arith.constant 0 : i32
    return %c0_i32, %c0_i32_0 : i32, i32
  }
  func.func @transform_4(%arg0: i32, %arg1: i32) -> (i32, i32) {
    %c0_i32 = arith.constant 0 : i32
    %c0_i32_0 = arith.constant 0 : i32
    %c0_i32_1 = arith.constant 0 : i32
    return %c0_i32, %c0_i32_0 : i32, i32
  }
  func.func @transform_5(%arg0: i32, %arg1: i32) -> (i32, i32, i32, i32) {
    %c0_i32 = arith.constant 0 : i32
    %c0_i32_0 = arith.constant 0 : i32
    %c0_i32_1 = arith.constant 0 : i32
    return %arg0, %arg1, %c0_i32, %c0_i32_0 : i32, i32, i32, i32
  }
}

</mosaic_0001>

<bundles_post_ra>
// kernel: tpu_custom_call.1
= control target key start
LH: loop header
LB: loop body
LE: loop exit
PB: predicated region body
PF: predicated region fallthrough
CT: control target
= control target key end

     0   :  { %s4353_s0 = inlined_call_operand.hbm [shape: bf16[2,16,16,128], index: 0, kind: input, shape index: {}]   ;;  %s4354_s1 = inlined_call_operand.hbm [shape: bf16[2,16,16,128], index: 1, kind: input, shape index: {}]   ;;  %s4355_s2 = inlined_call_operand.hbm [shape: bf16[128,128], index: 2, kind: input, shape index: {}]   ;;  %s4356_s3 = inlined_call_operand.hbm [shape: bf16[640,128], index: 3, kind: input, shape index: {}]   ;;  %s4357_s4 = inlined_call_operand.hbm [shape: bf16[128,128], index: 4, kind: input, shape index: {}]   ;;  %s4358_s5 = inlined_call_operand.hbm [shape: f32[2,16,16,128], index: 5, kind: output, shape index: {}]  }
   0x1   :  { %4374 = sst [smem:[#allocation35_spill]] %s4355_s2 }
   0x2   :  { %4375 = sst [smem:[#allocation36_spill]] %s4356_s3 }
   0x3   :  { %4376 = sst [smem:[#allocation37_spill]] %s4357_s4 }
   0x4   :  { %4377 = sst [smem:[#allocation38_spill]] %s4358_s5 }
   0x5   :  { %10 = vsyncpa [#allocation4], 0 }
   0x6   :  { %12 = vsyncpa [#allocation4 + $0x1], 0 }
   0x7   :  { %13 = vsyncpa [#allocation7], 0 }
   0x8   :  { %15 = vsyncpa [#allocation7 + $0x1], 0 }
   0x9   :  { %16 = vsyncpa [#allocation10], 0 }
   0xa   :  { %17 = vsyncpa [#allocation5], 0 }
   0xb   :  { %19 = vsyncpa [#allocation5 + $0x1], 0  ;;  %s3649_s18 = smov 0   ;;  %s3651_s19 = smov 0  }
   0xc   :  { %s3653_s20 = smov 0   ;;  %s3655_s21 = smov 0  }
   0xd   :  { %s3657_s22 = smov 0   ;;  %s3659_s23 = smov 0  }
   0xe   :  { %s3661_s24 = smov 0   ;;  %s3663_s25 = smov 0  }
   0xf   :  { %s3665_s26 = smov 0   ;;  %s3667_s27 = smov 0  }
  0x10   :  { %s3669_s28 = smov 0  }
  0x11 LB: > { %4378 = sst [smem:[#allocation18_spill]] %s3577_s21  ;;  %s3703_s29 = sadd.s32 4294967295, %s3605_s28   ;;  %s3605_s28 = sphi %s3669_s28, %s25_s28   ;;  %s3601_s27 = sphi %s3667_s27, %s4451_s27   ;;  %s3597_s26 = sphi %s3665_s26, %s4442_s26   ;;  %s3593_s25 = sphi %s3663_s25, %s4450_s25   ;;  %s3589_s24 = sphi %s3661_s24, %s4441_s24   ;;  %s3585_s23 = sphi %s3659_s23, %s4449_s23   ;;  %s3581_s22 = sphi %s3657_s22, %s4448_s22   ;;  %s3577_s21 = sphi %s3655_s21, %s4447_s21   ;;  %s3573_s20 = sphi %s3653_s20, %s4446_s20   ;;  %s3569_s19 = sphi %s3651_s19, %s4445_s19   ;;  %s3565_s18 = sphi %s3649_s18, %s4444_s18  }
  0x12   : > { %4379 = sst [smem:[#allocation19_spill]] %s3593_s25  ;;  %s2579_s30 = sadd.s32 4294967294, %s3605_s28  }
  0x13   : > { %4380 = sst [smem:[#allocation20_spill]] %s3597_s26  ;;  %p59_p0 = scmp.ne.s32.totalorder %s3581_s22, %s3577_s21 }
  0x14   : > { %p4359_p1 = scmp.eq.s32.totalorder %s3703_s29, 0  ;;  %p95_p2 = scmp.ne.s32.totalorder %s3569_s19, %s3565_s18 }
  0x15   : > { %p190_p5 = scmp.eq.s32.totalorder %s2579_s30, 3  ;;  %p2584_p7 = scmp.ge.s32.totalorder %s3605_s28, 1 }
  0x16   : > { %p3713_p4 = por %p4359_p1, %p59_p0  ;;  %p3719_p6 = por %p95_p2, %p4359_p1 }
  0x17   : > { %p3724_p8 = por %p190_p5, %p59_p0  ;;  %p197_p9 = scmp.lt.s32.totalorder %s3605_s28, 5 }
  0x18   : > { %s3607_s10 = smov [#allocation8]   ;;  %s3608_s13 = smov [#allocation9]  }
  0x19   : > { %s4383_s8 = scalar_select %p3724_p8, 1, 0 }
  0x1a   : > { %p3729_p10 = pnand %p2584_p7, %p197_p9  ;;  %s209_s11 = sshll.u32 %s3607_s10, 4  ;;  %s210_s11 = int_to_ptr.vmem [resolvable:$true] %s209_s11 }
  0x1b   : > { %4384 = sst [smem:[#allocation21_spill]] %s4383_s8  ;;  %s222_s14 = sshll.u32 %s3608_s13, 4  ;;  %s223_s14 = int_to_ptr.vmem [resolvable:$true] %s222_s14 }
  0x1c   : > { %p3084_p11 = pneg %p3729_p10  ;;  %s3609_s15 = smov [#allocation11]  }
  0x1d   : > { %s235_s16 = sshll.u32 %s3609_s15, 4  ;;  %s3350_s17 = scalar_lea.vmem %s210_s11, 1024  ;;  %s236_s16 = int_to_ptr.vmem [resolvable:$true] %s235_s16 }
  0x1e   : > { %p3737_p12 = pnand %p3084_p11, %p4359_p1  ;;  %p3351_p0 = scmp.ne.s32.totalorder %s210_s11, %s3350_s17 }
  0x1f   : > { %p3358_p7 = scmp.lt.s32.totalorder %s210_s11, %s210_s11  ;;  %p3359_p9 = scmp.lt.s32.totalorder %s3350_s17, %s3350_s17 }
  0x20   : > { %p3341_p13 = pneg %p3737_p12 }
  0x21   : > { %p3360_p11 = por %p3359_p9, %p3358_p7 }
  0x22   : > { %p3353_p2 = pnand %p3351_p0, %p3341_p13 }
  0x24   : > { %p3354_p5 = pneg %p3353_p2 }
  0x26   : > { %p3361_p1 = pnand %p3360_p11, %p3354_p5 }
  0x28   : > { %3364 = shalt.err (!%p3361_p1)
}
  0x29   : > { %s4361_s18 = smov 64   ;;  %s4363_s30 = smov 4  }
  0x2a   : > { %s4387_s2 = sld [smem:[#allocation35_spill]]  ;;  %s3376_s15 = scalar_lea.vmem %s223_s14, 5120 }
  0x2b   : > { %p3377_p0 = scmp.ne.s32.totalorder %s223_s14, %s3376_s15  ;;  %p3384_p5 = scmp.lt.s32.totalorder %s223_s14, %s223_s14 }
  0x2c   : > { %p3385_p1 = scmp.lt.s32.totalorder %s3376_s15, %s3376_s15 }
  0x2d   : > { %p3379_p2 = pnand %p3377_p0, %p3341_p13 }
  0x2e   : > { %p3386_p9 = por %p3385_p1, %p3384_p5 }
  0x2f   : > { %p3380_p7 = pneg %p3379_p2 }
  0x30   : > { %3087 = dma.hbm_to_vmem [thread:$0]  (!%p3737_p12), %s4387_s2, 1024, %s210_s11, [#allocation7], %s4361_s18, %s4361_s18, %s4363_s30  }
  0x31   : > { %p3387_p11 = pnand %p3386_p9, %p3380_p7 }
  0x33   : > { %3390 = shalt.err (!%p3387_p11)
}
  0x34   : > { %s4388_s3 = sld [smem:[#allocation36_spill]]  ;;  %s3402_s11 = scalar_lea.vmem %s236_s16, 1024 }
  0x35   : > { %p3403_p3 = scmp.ne.s32.totalorder %s236_s16, %s3402_s11  ;;  %p3410_p5 = scmp.lt.s32.totalorder %s236_s16, %s236_s16 }
  0x36   : > { %p3411_p7 = scmp.lt.s32.totalorder %s3402_s11, %s3402_s11 }
  0x37   : > { %p3405_p0 = pnand %p3403_p3, %p3341_p13 }
  0x38   : > { %p3412_p1 = por %p3411_p7, %p3410_p5 }
  0x39   : > { %p3406_p2 = pneg %p3405_p0 }
  0x3a   : > { %3090 = dma.hbm_to_vmem [thread:$0]  (!%p3737_p12), %s4388_s3, 5120, %s223_s14, [#allocation10], %s4361_s18, %s4361_s18, %s4363_s30  }
  0x3b   : > { %p3413_p9 = pnand %p3412_p1, %p3406_p2 }
  0x3d   : > { %3416 = shalt.err (!%p3413_p9)
}
  0x3e   : > { %s4389_s4 = sld [smem:[#allocation37_spill]]  ;;  %s34_s12 = sadd.s32 1, %s3597_s26 }
  0x3f   : > { %p35_p3 = scmp.ge.s32.totalorder %s34_s12, 2  ;;  %s37_s14 = sadd.s32 1, %s3601_s27 }
  0x40   : > { %s46_s13 = sadd.s32 1, %s3585_s23  ;;  %p53_p13 = scmp.ne.s32.totalorder %s3585_s23, %s3581_s22 }
  0x41   : > { %s4453_s12 = smov (%p35_p3, %s34_s12), 0  ;;  %s4455_s14 = smov (!%p35_p3, %s37_s14), %s3601_s27 }
  0x42   : > { %4390 = sst [smem:[#allocation22_spill]] %s4453_s12  ;;  %s42_s15 = ssub.s32 %s3597_s26, %s4453_s12 }
  0x43   : > { %p4372_p11 = scmp.eq.s32.totalorder %s3605_s28, 0  ;;  %p39_p0 = scmp.ge.s32.totalorder %s4455_s14, 2 }
  0x44   : > { %3093 = dma.hbm_to_vmem [thread:$0]  (!%p3737_p12), %s4389_s4, 1024, %s236_s16, [#allocation10], %s4361_s18, %s4361_s18, %s4363_s30  }
  0x45   : > { %s2580_s16 = sshll.u32 %s3597_s26, 3  ;;  %p3793_p12 = por %p4372_p11, %p53_p13 }
  0x46   : > { %s2581_s11 = sadd.s32 4294967295, %s2580_s16  ;;  %s4457_s14 = smov (%p39_p0, %s4455_s14), 0 }
  0x47   : > { %4392 = sst [smem:[#allocation23_spill]] %s4457_s14  ;;  %p71_p2 = scmp.gt.s32.totalorder %s2581_s11, 0 }
  0x48   : > { %s2582_s8 = sshll.u32 %s4453_s12, 3  ;;  %s41_s10 = ssub.s32 %s3601_s27, %s4457_s14 }
  0x49   : > { %s2583_s18 = sadd.s32 4294967295, %s2582_s8  ;;  %s43_s30 = sor.u32 %s42_s15, %s41_s10 }
  0x4a   : > { %p75_p5 = scmp.gt.s32.totalorder %s2583_s18, 0  ;;  %p44_p7 = scmp.eq.s32.totalorder %s43_s30, 0 }
  0x4b   : > { %p4393_p1 = scmp.eq.s32.totalorder %s3703_s29, 3  ;;  %s4459_s11 = smov (!%p71_p2, %s2581_s11), 0 }
  0x4c   : > { %s3812_s16 = scalar_select %p44_p7, %s3585_s23, %s46_s13  }
  0x4d   : > { %p3807_p9 = por %p4393_p1, %p53_p13  ;;  %s4461_s18 = smov (!%p75_p5, %s2583_s18), 0 }
  0x4e   : > { %4396 = sst [smem:[#allocation25_spill]] %s3812_s16  ;;  %p4373_p3 = scmp.lt.s32.totalorder %s3605_s28, 4 }
  0x4f   : > { %s4394_s2 = scalar_select %p3807_p9, 1, 0 }
  0x50   : > { %s249_s3 = sand.u32 1, %s3585_s23   ;;  %s78_s4 = ssub.s32 %s4459_s11, %s4461_s18 }
  0x51   : > { %4395 = sst [smem:[#allocation24_spill]] %s4394_s2  ;;  %s3816_s14 = sor.u32 %s78_s4, %s41_s10 }
  0x52   : > { %s2589_s15 = sshll.u32 %s249_s3, 6  ;;  %s2745_s30 = sshll.u32 %s3597_s26, 4 }
  0x53   : > { %s2592_s8 = sshll.u32 %s3601_s27, 5  ;;  %s253_s21 = scalar_lea.vmem [#allocation3], %s2589_s15 }
  0x54   : > { %s260_s12 = sadd.s32 %s2745_s30, %s2592_s8  ;;  %s263_s5 = sshll.u32 %s253_s21, 4  ;;  %s264_s5 = int_to_ptr.vmem [resolvable:$true] %s263_s5 }
  0x55   : > { %s2593_s2 = sshll.u32 %s260_s12, 6  ;;  %p3828_p13 = pnand %p4373_p3, %p3793_p12 }
  0x56   : > { %s262_s25 = scalar_lea.hbm %s4353_s0, %s2593_s2  ;;  %s2597_s4 = sshll.u32 %s4459_s11, 1 }
  0x57   : > { %s287_s10 = sadd.s32 %s2597_s4, %s2592_s8  ;;  %s250_s26 = scalar_lea.sflag [#allocation4], %s249_s3 }
  0x58   : > { %p3419_p2 = pneg %p3828_p13  ;;  %s3430_s15 = scalar_lea.vmem %s264_s5, 1024 }
  0x59   : > { %p3431_p5 = scmp.ne.s32.totalorder %s264_s5, %s3430_s15  ;;  %s3612_s21 = smov [#allocation3]  }
  0x5a   : > { %s3435_s12 = sshll.u32 %s3612_s21, 4  ;;  %s3436_s12 = int_to_ptr.vmem [resolvable:$false] %s3435_s12 }
  0x5b   : > { %p3433_p7 = pnand %p3431_p5, %p3419_p2  ;;  %s3437_s2 = scalar_lea.vmem %s3436_s12, 2048 }
  0x5c   : > { %p3438_p11 = scmp.lt.s32.totalorder %s264_s5, %s3436_s12  ;;  %p3439_p0 = scmp.lt.s32.totalorder %s3437_s2, %s3430_s15 }
  0x5d   : > { %p3434_p1 = pneg %p3433_p7 }
  0x5e   : > { %p3440_p12 = por %p3439_p0, %p3438_p11 }
  0x60   : > { %p3441_p3 = pnand %p3440_p12, %p3434_p1 }
  0x62   : > { %3444 = shalt.err (!%p3441_p3)
}
  0x63   : > { %s4398_s17 = smov 4   ;;  %s4399_s11 = smov 64  }
  0x64   : > { %3097 = dma.hbm_to_vmem [thread:$0]  (!%p3828_p13), %s262_s25, 1024, %s264_s5, %s250_s26, %s4399_s11, %s4399_s11, %s4398_s17  }
  0x65   : > { %s2599_s3 = sshll.u32 %s287_s10, 6  ;;  %s82_s16 = sadd.s32 1, %s3573_s20 }
  0x66   : > { %p4400_p11 = scmp.eq.s32.totalorder %s3816_s14, 0  ;;  %p89_p3 = scmp.ne.s32.totalorder %s3573_s20, %s3569_s19 }
  0x67   : > { %s273_s8 = sand.u32 1, %s3605_s28   ;;  %s289_s4 = scalar_lea.hbm %s4354_s1, %s2599_s3 }
  0x68   : > { %s3843_s30 = scalar_select %p4400_p11, %s3573_s20, %s82_s16  }
  0x69   : > { %s275_s15 = sand.u32 1, %s3573_s20   ;;  %p4401_p0 = scmp.eq.s32.totalorder %s3605_s28, 0 }
  0x6a   : > { %s2594_s21 = sshll.u32 %s275_s15, 3  ;;  %p4402_p5 = scmp.lt.s32.totalorder %s3605_s28, 4 }
  0x6b   : > { %p91_p2 = por %p89_p3, %p4401_p0  ;;  %s277_s12 = scalar_lea.vmem [#allocation6], %s2594_s21 }
  0x6c   : > { %s290_s2 = sshll.u32 %s277_s12, 4  ;;  %s274_s25 = scalar_lea.sflag [#allocation7], %s273_s8  ;;  %s291_s2 = int_to_ptr.vmem [resolvable:$true] %s290_s2 }
  0x6d   : > { %p3856_p7 = pnand %p4402_p5, %p91_p2  ;;  %s3458_s26 = scalar_lea.vmem %s291_s2, 128 }
  0x6e   : > { %p3459_p1 = scmp.ne.s32.totalorder %s291_s2, %s3458_s26  ;;  %s3613_s14 = smov [#allocation6]  }
  0x6f   : > { %p3447_p13 = pneg %p3856_p7  ;;  %s3463_s10 = sshll.u32 %s3613_s14, 4  ;;  %s3464_s10 = int_to_ptr.vmem [resolvable:$false] %s3463_s10 }
  0x70   : > { %s3465_s3 = scalar_lea.vmem %s3464_s10, 256  ;;  %p3466_p3 = scmp.lt.s32.totalorder %s291_s2, %s3464_s10 }
  0x71   : > { %p3461_p12 = pnand %p3459_p1, %p3447_p13  ;;  %p3467_p0 = scmp.lt.s32.totalorder %s3465_s3, %s3458_s26 }
  0x73   : > { %p3462_p11 = pneg %p3461_p12  ;;  %p3468_p8 = por %p3467_p0, %p3466_p3 }
  0x75   : > { %p3469_p2 = pnand %p3468_p8, %p3462_p11 }
  0x77   : > { %3472 = shalt.err (!%p3469_p2)
}
  0x78   : > { %3100 = dma.hbm_to_vmem [thread:$0]  (!%p3856_p7), %s289_s4, 128, %s291_s2, %s274_s25, %s4399_s11, %s4399_s11, %s4398_s17  }
  0x79   : > { %302 = sbr.rel (%p3729_p10) target bundleno = 915 (0x393), region = 40 }
  0x7e   : > { %s3870_s16 = sand.u32 1, %s3581_s22  }
  0x7f   : > { %s2601_s8 = sshll.u32 %s3870_s16, 6  ;;  %s305_s13 = scalar_lea.sflag [#allocation4], %s3870_s16 }
  0x80   : > { %s3874_s18 = scalar_lea.vmem [#allocation3], %s2601_s8 }
  0x81   : > { %3544 = dma.done.wait (%p3713_p4), %s305_s13, 1024  }
  0x82   : > { %3546 = vsyncadd (%p3713_p4), %s305_s13, 4294966272  ;;  %s313_s9 = sand.u32 1, %s3703_s29   ;;  %s315_s17 = sand.u32 1, %s3569_s19  }
  0x83   : > { %s3882_s11 = sshll.u32 %s315_s17, 3  ;;  %s314_s4 = scalar_lea.sflag [#allocation7], %s313_s9 }
  0x84   : > { %s317_s15 = scalar_lea.vmem [#allocation6], %s3882_s11 }
  0x85   : > { %3548 = dma.done.wait (%p3719_p6), %s314_s4, 128  }
  0x86   : > { %3550 = vsyncadd (%p3719_p6), %s314_s4, 4294967168  ;;  %p4404_p8 = scmp.eq.s32.totalorder %s3703_s29, 0 }
  0x88   : > { %3552 = dma.done.wait (%p4404_p8), [#allocation7], 1024   ;;  %p4405_p4 = pmov %p4404_p8 }
  0x8a   : > { %3554 = vsyncadd (%p4405_p4), [#allocation7], 4294966272  ;;  %p4406_p10 = pmov %p4405_p4 }
  0x8b   : > { %p4407_p5 = pmov %p4405_p4 }
  0x8c   : > { %3556 = dma.done.wait (%p4406_p10), [#allocation10], 6144  }
  0x8d   : > { %3558 = vsyncadd (%p4407_p5), [#allocation10], 4294961152  ;;  %v3614_v0 = vmov 0.0   ;;  %vm3615_vm0 = vmmov 0   ;;  %v3210_v1 = vld [vmem:[#allocation8 + $0x38] sm:$0xff]   ;;  %v3212_v3 = vld [vmem:[#allocation8 + $0x30] sm:$0xff]  }
  0x8e   : > { %2982 = vmatprep.subr.bf16.mxu1 %v3614_v0  ;;  %2998 = vmatprep.mubr.msk.bf16.mxu1 %vm3615_vm0, %v3614_v0  ;;  %v3211_v2 = vld [vmem:[#allocation8 + $0x38] sm:$0xff]   ;;  %v3213_v4 = vld [vmem:[#allocation8 + $0x30] sm:$0xff]   ;;  %v3214_v5 = vld [vmem:[#allocation8 + $0x28] sm:$0xff]   ;;  %vm369_vm1 = vsmask.f32 256  ;;  %vm368_vm2 = vcmask 1040384  }
  0x8f   : > { %2950 = vmatprep.subr.bf16.mxu0 %v3210_v1  ;;  %2983 = vmatpush3.bf16.msra.mxu1 %v3211_v2  ;;  %v3215_v6 = vld [vmem:[#allocation8 + $0x28] sm:$0xff]   ;;  %v3216_v7 = vld [vmem:[#allocation8 + $0x20] sm:$0xff]   ;;  %v3218_v9 = vld [vmem:[#allocation8 + $0x18] sm:$0xff]   ;;  %vm398_vm4 = vsmask.f32 7938  ;;  %p1052_p6 = scmp.gt.s32.totalorder %s3589_s24, 0 }
  0x90   : > { %2951 = vmatpush3.bf16.msra.mxu0 %v3210_v1  ;;  %2984 = vmatprep.subr.bf16.mxu1 %v3614_v0  ;;  %v3217_v8 = vld [vmem:[#allocation8 + $0x20] sm:$0xff]   ;;  %v3219_v10 = vld [vmem:[#allocation8 + $0x18] sm:$0xff]   ;;  %v3220_v11 = vld [vmem:[#allocation8 + $0x10] sm:$0xff]   ;;  %vm879_vm6 = vcmask 1043456   ;;  %vm716_vm7 = vsmask.f32 4368 }
  0x91   : > { %2952 = vmatprep.subr.bf16.mxu0 %v3212_v3  ;;  %v427_v12 = vld [vmem:[%s3874_s18] sm:$0xff]   ;;  %vm3900_vm3 = vmand %vm368_vm2, %vm369_vm1  ;;  %v3222_v15 = vld [vmem:[#allocation8 + $0x8] sm:$0xff]   ;;  %s1053_s29 = scalar_select %p1052_p6, 1, 0  ;;  %vm1219_vm10 = vsmask.f32 7424 }
  0x92   : > { %v3221_v14 = vld [vmem:[#allocation8 + $0x10] sm:$0xff]   ;;  %v371_v16 = vld [vmem:[#allocation2] sm:$0x1]  ;;  %v3223_v17 = vld [vmem:[#allocation8 + $0x8] sm:$0xff]   ;;  %2966 = vmatprep.mubr.bf16.mxu0 %v427_v12  ;;  %vm1348_vm11 = vcmask 1046528   ;;  %s2606_s7 = sshll.u32 %s3870_s16, 7 }
  0x93   : > { %2985 = vmatpush3.bf16.msra.mxu1 %v3213_v4  ;;  %v372_v18 = vsel %vm3900_vm3, 0, %v371_v16  ;;  %v3224_v19 = vld [vmem:[#allocation8] sm:$0xff]   ;;  %v429_v21 = vld [vmem:[%s3874_s18 + $0x8] sm:$0xff]   ;;  %v433_v25 = vld [vmem:[%s3874_s18 + $0x18] sm:$0xff]   ;;  %s1054_s6 = scvt.s32.f32 %s1053_s29  ;;  %s4259_s21 = scalar_lea.vmem [#allocation12], %s2606_s7 }
  0x94   : > { %2953 = vmatpush3.bf16.msra.mxu0 %v3212_v3  ;;  %2986 = vmatprep.subr.bf16.mxu1 %v3614_v0  ;;  %373 = vst [vmem:[#allocation2] sm:$0x1] %v372_v18  ;;  %v3225_v20 = vld [vmem:[#allocation8] sm:$0xff]   ;;  %v3235_v23 = vld [vmem:[#allocation9 + $0xf8] sm:$0xff]   ;;  %v435_v26 = vld [vmem:[%s3874_s18 + $0x20] sm:$0xff]   ;;  %s4434_s12 = sld [smem:[#allocation19_spill]] }
  0x95   : > { %2954 = vmatprep.subr.bf16.mxu0 %v3214_v5  ;;  %v431_v22 = vld [vmem:[%s3874_s18 + $0x10] sm:$0xff]   ;;  %v3227_v24 = vld [vmem:[%s317_s15] sm:$0xff]   ;;  %v441_v29 = vld [vmem:[%s3874_s18 + $0x38] sm:$0xff]   ;;  %s2764_s2 = sshll.u32 %s3589_s24, 4  ;;  %s2434_s26 = sshll.u32 %s4259_s21, 4  ;;  %s4284_s26 = int_to_ptr.vmem [resolvable:$true] %s2434_s26 }
  0x96   : > { %v437_v27 = vld [vmem:[%s3874_s18 + $0x28] sm:$0xff]   ;;  %v439_v28 = vld [vmem:[%s3874_s18 + $0x30] sm:$0xff]   ;;  %v3238_v31 = vld [vmem:[#allocation9 + $0xf0] sm:$0xff]   ;;  %s4436_s8 = sld [smem:[#allocation38_spill]]  ;;  %s3473_s9 = scalar_lea.vmem %s4284_s26, 2048 }
  0x97   : > { %2987 = vmatpush3.bf16.msra.mxu1 %v3215_v6  ;;  %v3236_v30 = vld [vmem:[#allocation9 + $0xb8] sm:$0xff]   ;;  %v3240_v33 = vld [vmem:[#allocation9 + $0xb0] sm:$0xff]   ;;  %vm3917_vm5 = vmand %vm368_vm2, %vm398_vm4  ;;  %p3474_p7 = scmp.ne.s32.totalorder %s4284_s26, %s3473_s9  ;;  %s3616_s17 = smov [#allocation12]  }
  0x98   : > { %2955 = vmatpush3.bf16.msra.mxu0 %v3214_v5  ;;  %2988 = vmatprep.subr.bf16.mxu1 %v3614_v0  ;;  %v3237_v32 = vld [vmem:[#allocation9 + $0x78] sm:$0xff]   ;;  %v3242_v37 = vld [vmem:[#allocation9 + $0xe8] sm:$0xff]   ;;  %v374_v39 = vld [vmem:[#allocation2 + $0xc] sm:$0x1]  ;;  %s3477_s11 = sshll.u32 %s3616_s17, 4  ;;  %s3478_s11 = int_to_ptr.vmem [resolvable:$false] %s3477_s11 }
  0x99   : > { %2956 = vmatprep.subr.bf16.mxu0 %v3216_v7  ;;  %v3239_v34 = vld [vmem:[#allocation9 + $0x38] sm:$0xff]   ;;  %v400_v40 = vld [vmem:[#allocation2 + $0x8] sm:$0x1]  ;;  %v3241_v41 = vld [vmem:[#allocation9 + $0x70] sm:$0xff]   ;;  %v375_v42 = vsel %vm3900_vm3, 0, %v374_v39  ;;  %p3475_p13 = pnand %p3474_p7, %p3807_p9  ;;  %s3479_s4 = scalar_lea.vmem %s3478_s11, 4096 }
  0x9a   : > { %v377_v36 = vld [vmem:[#allocation2 + $0x18] sm:$0x1]  ;;  %v401_v43 = vsel %vm3917_vm5, 0, %v400_v40  ;;  %v3243_v44 = vld [vmem:[#allocation9 + $0x30] sm:$0xff]   ;;  %v3244_v45 = vld [vmem:[#allocation9 + $0xa8] sm:$0xff]   ;;  %s2741_s5 = sshll.u32 %s4434_s12, 5  ;;  %p3480_p12 = scmp.lt.s32.totalorder %s4284_s26, %s3478_s11 }
  0x9b   : > { %2989 = vmatpush3.bf16.msra.mxu1 %v3217_v8  ;;  %v378_v38 = vsel %vm3900_vm3, 0, %v377_v36  ;;  %376 = vst [vmem:[#allocation2 + $0xc] sm:$0x1] %v375_v42  ;;  %402 = vst [vmem:[#allocation2 + $0x8] sm:$0x1] %v401_v43  ;;  %v3246_v49 = vld [vmem:[#allocation9 + $0xe0] sm:$0xff]   ;;  %v1055_v36 = vstv %s1054_s6  ;;  %s2431_s25 = sadd.s32 %s2764_s2, %s2741_s5  ;;  %p3476_p1 = pneg %p3475_p13 }
  0x9c   : > { %2957 = vmatpush3.bf16.msra.mxu0 %v3216_v7  ;;  %2990 = vmatprep.subr.bf16.mxu1 %v3614_v0  ;;  %379 = vst [vmem:[#allocation2 + $0x18] sm:$0x1] %v378_v38  ;;  %v406_v46 = vld [vmem:[#allocation2 + $0x20] sm:$0x1]  ;;  %v403_v48 = vld [vmem:[#allocation2 + $0x14] sm:$0x1]  ;;  %vm3961_vm8 = vmand %vm879_vm6, %vm398_vm4  ;;  %p3481_p11 = scmp.lt.s32.totalorder %s3479_s4, %s3473_s9 }
  0x9d   : > { %2958 = vmatprep.subr.bf16.mxu0 %v3218_v9  ;;  %v407_v47 = vsel %vm3917_vm5, 0, %v406_v46  ;;  %v404_v50 = vsel %vm3917_vm5, 0, %v403_v48  ;;  %v3245_v51 = vld [vmem:[#allocation9 + $0x68] sm:$0xff]   ;;  %v3248_v52 = vld [vmem:[#allocation9 + $0xa0] sm:$0xff]   ;;  %v3250_v54 = vld [vmem:[#allocation9 + $0xd8] sm:$0xff]   ;;  %s2742_s14 = sshll.u32 %s2431_s25, 7 }
  0x9e   : > { %408 = vst [vmem:[#allocation2 + $0x20] sm:$0x1] %v407_v47  ;;  %405 = vst [vmem:[#allocation2 + $0x14] sm:$0x1] %v404_v50  ;;  %v3247_v53 = vld [vmem:[#allocation9 + $0x28] sm:$0xff]   ;;  %v3249_v55 = vld [vmem:[#allocation9 + $0x60] sm:$0xff]   ;;  %s4290_s13 = scalar_lea.hbm %s4436_s8, %s2742_s14  ;;  %p3482_p3 = por %p3481_p11, %p3480_p12 }
  0x9f   : > { %2991 = vmatpush3.bf16.msra.mxu1 %v3219_v10  ;;  %v3251_v56 = vld [vmem:[#allocation9 + $0x20] sm:$0xff]   ;;  %v3252_v57 = vld [vmem:[#allocation9 + $0x98] sm:$0xff]   ;;  %v3254_v58 = vld [vmem:[#allocation9 + $0xd0] sm:$0xff]  }
  0xa0   : > { %2959 = vmatpush3.bf16.msra.mxu0 %v3218_v9  ;;  %2992 = vmatprep.subr.bf16.mxu1 %v3614_v0  ;;  %v3253_v59 = vld [vmem:[#allocation9 + $0x58] sm:$0xff]   ;;  %v3256_v60 = vld [vmem:[#allocation9 + $0x90] sm:$0xff]   ;;  %v3258_v1 = vld [vmem:[#allocation9 + $0xc8] sm:$0xff]   ;;  %p3483_p0 = pnand %p3482_p3, %p3476_p1 }
  0xa1   : > { %2960 = vmatprep.subr.bf16.mxu0 %v3220_v11  ;;  %v383_v61 = vld [vmem:[#allocation2 + $0x30] sm:$0x1]  ;;  %v3255_v62 = vld [vmem:[#allocation9 + $0x18] sm:$0xff]   ;;  %v3260_v4 = vld [vmem:[#allocation9 + $0x88] sm:$0xff]  }
  0xa2   : > { %v384_v63 = vsel %vm3900_vm3, 0, %v383_v61  ;;  %v3257_v3 = vld [vmem:[#allocation9 + $0x50] sm:$0xff]   ;;  %v412_v5 = vld [vmem:[#allocation2 + $0x38] sm:$0x1]  ;;  %v3262_v10 = vld [vmem:[#allocation9 + $0xc0] sm:$0xff]  }
  0xa3   : > { %2993 = vmatpush3.bf16.msra.mxu1 %v3221_v14  ;;  %385 = vst [vmem:[#allocation2 + $0x30] sm:$0x1] %v384_v63  ;;  %v409_v6 = vld [vmem:[#allocation2 + $0x2c] sm:$0x1]  ;;  %v413_v8 = vsel %vm3917_vm5, 0, %v412_v5  ;;  %v3264_v12 = vld [vmem:[#allocation9 + $0x80] sm:$0xff]   ;;  %vm3973_vm9 = vmor %vm369_vm1, %vm716_vm7 }
  0xa4   : > { %2961 = vmatpush3.bf16.msra.mxu0 %v3220_v11  ;;  %2994 = vmatprep.subr.bf16.mxu1 %v3614_v0  ;;  %v3259_v7 = vld [vmem:[#allocation9 + $0x10] sm:$0xff]   ;;  %v410_v9 = vsel %vm3917_vm5, 0, %v409_v6  ;;  %414 = vst [vmem:[#allocation2 + $0x38] sm:$0x1] %v413_v8  ;;  %v3261_v11 = vld [vmem:[#allocation9 + $0x48] sm:$0xff]  }
  0xa5   : > { %2962 = vmatprep.subr.bf16.mxu0 %v3222_v15  ;;  %411 = vst [vmem:[#allocation2 + $0x2c] sm:$0x1] %v410_v9  ;;  %v3263_v14 = vld [vmem:[#allocation9 + $0x8] sm:$0xff]   ;;  %v386_v18 = vld [vmem:[#allocation2 + $0x3c] sm:$0x1] }
  0xa6   : > { %v1084_v5 = vld [vmem:[#allocation2] sm:$0xf]  ;;  %v881_v6 = vld [vmem:[#allocation2 + $0xc] sm:$0xf] }
  0xa7   : > { %2995 = vmatpush3.bf16.msra.mxu1 %v3223_v17  ;;  %v3266_v17 = vld [vmem:[#allocation9 + $0x40] sm:$0xff]  }
  0xa8   : > { %2963 = vmatpush3.bf16.msra.mxu0 %v3222_v15  ;;  %2996 = vmatprep.subr.bf16.mxu1 %v3614_v0  ;;  %v380_v0 = vld [vmem:[#allocation2 + $0x24] sm:$0x1]  ;;  %v389_v15 = vld [vmem:[#allocation2 + $0x48] sm:$0x1] }
  0xa9   : > { %2964 = vmatprep.subr.bf16.mxu0 %v3224_v19  ;;  %v381_v2 = vsel %vm3900_vm3, 0, %v380_v0  ;;  %v390_v16 = vsel %vm3900_vm3, 0, %v389_v15 }
  0xaa   : > { %382 = vst [vmem:[#allocation2 + $0x24] sm:$0x1] %v381_v2  ;;  %391 = vst [vmem:[#allocation2 + $0x48] sm:$0x1] %v390_v16 }
  0xab   : > { %2997 = vmatpush3.bf16.msra.mxu1 %v3225_v20  ;;  %v3270_v20 = vld [vmem:[#allocation9] sm:$0xff]  }
  0xac   : > { %2965 = vmatpush3.bf16.msra.mxu0 %v3224_v19  ;;  %2854 = vmatprep.subr.bf16.mxu1 %v3235_v23  ;;  %v387_v19 = vsel %vm3900_vm3, 0, %v386_v18  ;;  %v3945_v23 = vld [vmem:[#allocation9 + $0x138] sm:$0xff]  }
  0xad   : > { %2790 = vmatprep.subr.bf16.mxu0 %v3237_v32  ;;  %388 = vst [vmem:[#allocation2 + $0x3c] sm:$0x1] %v387_v19  ;;  %v421_v32 = vld [vmem:[#allocation2 + $0x5c] sm:$0x1] }
  0xae   : > { %2999 = vmatmul.mubr.bf16.vlgmr.msra.gmra.mxu1 %v3227_v24  ;;  %v415_v24 = vld [vmem:[#allocation2 + $0x44] sm:$0x1] }
  0xaf   : > { %2967 = vmatmul.mubr.bf16.vlgmr.msra.gmra.mxu0 %v429_v21  ;;  %2855 = vmatpush3.bf16.msra.mxu1 %v3236_v30  ;;  %v418_v21 = vld [vmem:[#allocation2 + $0x50] sm:$0x1]  ;;  %v424_v30 = vld [vmem:[#allocation2 + $0x68] sm:$0x1] }
  0xb0   : > { %2970 = vmatprep.mubr.bf16.mxu0 %v431_v22  ;;  %2856 = vmatprep.subr.bf16.mxu1 %v3238_v31  ;;  %v419_v22 = vsel %vm3917_vm5, 0, %v418_v21  ;;  %v425_v31 = vsel %vm3917_vm5, 0, %v424_v30 }
  0xb1   : > { %2791 = vmatpush3.bf16.msra.mxu0 %v3239_v34  ;;  %420 = vst [vmem:[#allocation2 + $0x50] sm:$0x1] %v419_v22  ;;  %426 = vst [vmem:[#allocation2 + $0x68] sm:$0x1] %v425_v31 }
  0xb2   : > { %2792 = vmatprep.subr.bf16.mxu0 %v3241_v41 }
  0xb3   : > { %2857 = vmatpush3.bf16.msra.mxu1 %v3240_v33  ;;  %v422_v33 = vsel %vm3917_vm5, 0, %v421_v32 }
  0xb4   : > { %2858 = vmatprep.subr.bf16.mxu1 %v3242_v37  ;;  %423 = vst [vmem:[#allocation2 + $0x5c] sm:$0x1] %v422_v33 }
  0xb5   : > { %2793 = vmatpush3.bf16.msra.mxu0 %v3243_v44 }
  0xb6   : > { %2794 = vmatprep.subr.bf16.mxu0 %v3245_v51 }
  0xb7   : > { %2971 = vmatmul.mubr.bf16.gmra.mxu0 %v433_v25  ;;  %2859 = vmatpush3.bf16.msra.mxu1 %v3244_v45  ;;  %v416_v25 = vsel %vm3917_vm5, 0, %v415_v24 }
  0xb8   : > { %2974 = vmatprep.mubr.bf16.mxu0 %v435_v26  ;;  %2860 = vmatprep.subr.bf16.mxu1 %v3246_v49  ;;  %417 = vst [vmem:[#allocation2 + $0x44] sm:$0x1] %v416_v25  ;;  %v395_v26 = vld [vmem:[#allocation2 + $0x60] sm:$0x1] }
  0xb9   : > { %2795 = vmatpush3.bf16.msra.mxu0 %v3247_v53 }
  0xba   : > { %2796 = vmatprep.subr.bf16.mxu0 %v3249_v55 }
  0xbb   : > { %2861 = vmatpush3.bf16.msra.mxu1 %v3248_v52 }
  0xbc   : > { %2862 = vmatprep.subr.bf16.mxu1 %v3250_v54 }
  0xbd   : > { %2797 = vmatpush3.bf16.msra.mxu0 %v3251_v56 }
  0xbe   : > { %2798 = vmatprep.subr.bf16.mxu0 %v3253_v59 }
  0xbf   : > { %2975 = vmatmul.mubr.bf16.gmra.mxu0 %v437_v27  ;;  %2863 = vmatpush3.bf16.msra.mxu1 %v3252_v57  ;;  %v396_v27 = vsel %vm3900_vm3, 0, %v395_v26  ;;  %v892_v26 = vld [vmem:[#allocation2 + $0x20] sm:$0x1] }
  0xc0   : > { %2978 = vmatprep.mubr.bf16.mxu0 %v439_v28  ;;  %2864 = vmatprep.subr.bf16.mxu1 %v3254_v58  ;;  %397 = vst [vmem:[#allocation2 + $0x60] sm:$0x1] %v396_v27  ;;  %v392_v28 = vld [vmem:[#allocation2 + $0x54] sm:$0x1]  ;;  %v888_v58 = vld [vmem:[#allocation2 + $0x18] sm:$0xf] }
  0xc1   : > { %2799 = vmatpush3.bf16.msra.mxu0 %v3255_v62 }
  0xc2   : > { %2800 = vmatprep.subr.bf16.mxu0 %v3257_v3 }
  0xc3   : > { %2865 = vmatpush3.bf16.msra.mxu1 %v3256_v60 }
  0xc4   : > { %2866 = vmatprep.subr.bf16.mxu1 %v3258_v1 }
  0xc5   : > { %2801 = vmatpush3.bf16.msra.mxu0 %v3259_v7 }
  0xc6   : > { %2802 = vmatprep.subr.bf16.mxu0 %v3261_v11 }
  0xc7   : > { %2979 = vmatmul.mubr.bf16.gmra.mxu0 %v441_v29  ;;  %2867 = vmatpush3.bf16.msra.mxu1 %v3260_v4  ;;  %v393_v29 = vsel %vm3900_vm3, 0, %v392_v28  ;;  %v3302_v4 = vld [vmem:[#allocation9 + $0x108] sm:$0xff]  }
  0xc8   : > { %2868 = vmatprep.subr.bf16.mxu1 %v3262_v10  ;;  %394 = vst [vmem:[#allocation2 + $0x54] sm:$0x1] %v393_v29 }
  0xc9   : > { %2803 = vmatpush3.bf16.msra.mxu0 %v3263_v14 }
  0xca   : > { %2804 = vmatprep.subr.bf16.mxu0 %v3266_v17 }
  0xcb   : > { %2869 = vmatpush3.bf16.msra.mxu1 %v3264_v12 }
  0xcd   : > { %2805 = vmatpush3.bf16.msra.mxu0 %v3270_v20 }
  0xce   : > { %3002 = vmatprep.subr.bf16.mxu0 %v3945_v23 }
 0x16e   : > { %v1043_v34 = vpop.f32.mrf.mxu1 }
 0x16f   : > { %v2968_v37 = vpop.f32.mrf.mxu0  ;;  %v1050_v38 = vmax.f32 %v1043_v34, 0.0  ;;  %v1088_v34 = vld [vmem:[#allocation2 + $0x8] sm:$0x1] }
 0x170   : > { %v654_v39 = vmax.f32 %v2968_v37, 0.0  ;;  %v3000_v40 = vpop.f32.mrf.mxu1 }
 0x171   : > { %v589_v41 = vpop.f32.mrf.mxu0  ;;  %v1056_v42 = vmul.f32 %v1055_v36, %v1050_v38 }
 0x172   : > { %v2748_v43 = vpack.c.bf16 %v654_v39, %v654_v39  ;;  %v652_v44 = vmax.f32 %v589_v41, 0.0  ;;  %v1046_v45 = vpop.f32.mrf.mxu1 }
 0x173   : > { %v2969_v46 = vpop.f32.mrf.mxu0  ;;  %v2762_v47 = vpack.c.bf16 %v1056_v42, %v1056_v42  ;;  %v1051_v50 = vmax.f32 %v1046_v45, 0.0 }
 0x174   : > { %v736_v48 = vshrl.u32 %v2748_v43, 16  ;;  %v739_v35 = vshll.u32 %v2748_v43, 16  ;;  %v2746_v49 = vpack.c.bf16 %v652_v44, %v652_v44  ;;  %v655_v51 = vmax.f32 %v2969_v46, 0.0  ;;  %v3001_v52 = vpop.f32.mrf.mxu1  ;;  %v885_v44 = vld [vmem:[#allocation2 + $0x14] sm:$0x1] }
 0x175   : > { %v592_v53 = vpop.f32.mrf.mxu0  ;;  %v1065_v54 = vshrl.u32 %v2762_v47, 16  ;;  %v1068_v55 = vshll.u32 %v2762_v47, 16  ;;  %v1057_v60 = vmul.f32 %v1055_v36, %v1051_v50 }
 0x176   : > { %v738_v56 = vrot.slane %v736_v48, 7  ;;  %v719_v57 = vshrl.u32 %v2746_v49, 16  ;;  %v722_v59 = vshll.u32 %v2746_v49, 16  ;;  %v2749_v61 = vpack.c.bf16 %v655_v51, %v655_v51 }
 0x177   : > { %v653_v62 = vmax.f32 %v592_v53, 0.0  ;;  %v2972_v63 = vpop.f32.mrf.mxu0  ;;  %v1067_v0 = vrot.slane %v1065_v54, 7  ;;  %v2763_v7 = vpack.c.bf16 %v1057_v60, %v1057_v60 }
 0x178   : > { %v741_v1 = vor.u32 %v739_v35, %v738_v56  ;;  %v742_v2 = vrot.slane %v738_v56, 4  ;;  %v721_v3 = vrot.slane %v719_v57, 7  ;;  %v744_v8 = vshrl.u32 %v2749_v61, 16 }
 0x179   : > { %v747_v9 = vshll.u32 %v2749_v61, 16  ;;  %v2747_v10 = vpack.c.bf16 %v653_v62, %v653_v62  ;;  %v605_v11 = vpop.f32.mrf.mxu0  ;;  %v1070_v12 = vor.u32 %v1068_v55, %v1067_v0  ;;  %v1071_v14 = vrot.slane %v1067_v0, 4 }
 0x17a   : > { %v889_v15 = vsel %vm3961_vm8, %v741_v1, %v888_v58  ;;  %v724_v16 = vor.u32 %v722_v59, %v721_v3  ;;  %v725_v17 = vrot.slane %v721_v3, 4  ;;  %v1073_v18 = vshrl.u32 %v2763_v7, 16 }
 0x17b   : > { %890 = vst [vmem:[#allocation2 + $0x18] sm:$0xf] %v889_v15  ;;  %v1076_v19 = vshll.u32 %v2763_v7, 16  ;;  %v746_v20 = vrot.slane %v744_v8, 7  ;;  %v2973_v21 = vpop.f32.mrf.mxu0  ;;  %v1085_v22 = vsel %vm3961_vm8, %v1070_v12, %v1084_v5  ;;  %v727_v27 = vshrl.u32 %v2747_v10, 16 }
 0x17c   : > { %v882_v24 = vsel %vm3961_vm8, %v724_v16, %v881_v6  ;;  %v730_v28 = vshll.u32 %v2747_v10, 16  ;;  %1086 = vst [vmem:[#allocation2] sm:$0xf] %v1085_v22  ;;  %v1075_v29 = vrot.slane %v1073_v18, 7  ;;  %v658_v32 = vmax.f32 %v2972_v63, 0.0 }
 0x17d   : > { %883 = vst [vmem:[#allocation2 + $0xc] sm:$0xf] %v882_v24  ;;  %v749_v30 = vor.u32 %v747_v9, %v746_v20  ;;  %v751_v31 = vrot.slane %v746_v20, 4  ;;  %v608_v33 = vpop.f32.mrf.mxu0  ;;  %v729_v36 = vrot.slane %v727_v27, 7  ;;  %v656_v37 = vmax.f32 %v605_v11, 0.0 }
 0x17e   : > { %v659_v38 = vmax.f32 %v2973_v21, 0.0  ;;  %v657_v39 = vmax.f32 %v608_v33, 0.0  ;;  %v1078_v40 = vor.u32 %v1076_v19, %v1075_v29  ;;  %v1080_v41 = vrot.slane %v1075_v29, 4  ;;  %v895_v8 = vld [vmem:[#allocation2 + $0x24] sm:$0xf] }
 0x17f   : > { %v750_v42 = vsel %vm3973_vm9, %v742_v2, %v749_v30  ;;  %v893_v43 = vsel %vm3900_vm3, %v751_v31, %v892_v26  ;;  %v732_v45 = vor.u32 %v730_v28, %v729_v36  ;;  %v734_v46 = vrot.slane %v729_v36, 4  ;;  %v2976_v35 = vpop.f32.mrf.mxu0  ;;  %v902_v2 = vld [vmem:[#allocation2 + $0x30] sm:$0xf]  ;;  %v906_v9 = vld [vmem:[#allocation2 + $0x38] sm:$0x1] }
 0x180   : > { %891 = vst [vmem:[#allocation2 + $0x1c] sm:$0xf] %v750_v42  ;;  %894 = vst [vmem:[#allocation2 + $0x20] sm:$0x1] %v893_v43  ;;  %v2752_v47 = vpack.c.bf16 %v658_v32, %v658_v32  ;;  %v2750_v48 = vpack.c.bf16 %v656_v37, %v656_v37  ;;  %v1079_v49 = vsel %vm3973_vm9, %v1071_v14, %v1078_v40  ;;  %v662_v0 = vmax.f32 %v2976_v35, 0.0 }
 0x181   : > { %v1089_v50 = vsel %vm3900_vm3, %v1080_v41, %v1088_v34  ;;  %v2753_v51 = vpack.c.bf16 %v659_v38, %v659_v38  ;;  %v2751_v52 = vpack.c.bf16 %v657_v39, %v657_v39  ;;  %1087 = vst [vmem:[#allocation2 + $0x4] sm:$0xf] %v1079_v49  ;;  %v733_v53 = vsel %vm3973_vm9, %v725_v17, %v732_v45  ;;  %v621_v1 = vpop.f32.mrf.mxu0  ;;  %v899_v17 = vld [vmem:[#allocation2 + $0x2c] sm:$0x1]  ;;  %v916_v38 = vld [vmem:[#allocation2 + $0x48] sm:$0xf] }
 0x182   : > { %1090 = vst [vmem:[#allocation2 + $0x8] sm:$0x1] %v1089_v50  ;;  %v886_v54 = vsel %vm3900_vm3, %v734_v46, %v885_v44  ;;  %v770_v55 = vshrl.u32 %v2752_v47, 16  ;;  %v773_v56 = vshll.u32 %v2752_v47, 16  ;;  %884 = vst [vmem:[#allocation2 + $0x10] sm:$0xf] %v733_v53  ;;  %v2756_v11 = vpack.c.bf16 %v662_v0, %v662_v0 }
 0x183   : > { %887 = vst [vmem:[#allocation2 + $0x14] sm:$0x1] %v886_v54  ;;  %v753_v57 = vshrl.u32 %v2750_v48, 16  ;;  %v756_v58 = vshll.u32 %v2750_v48, 16  ;;  %v778_v59 = vshrl.u32 %v2753_v51, 16  ;;  %v781_v60 = vshll.u32 %v2753_v51, 16  ;;  %v2977_v24 = vpop.f32.mrf.mxu0 }
 0x184   : > { %v772_v61 = vrot.slane %v770_v55, 7  ;;  %v761_v62 = vshrl.u32 %v2751_v52, 16  ;;  %v764_v63 = vshll.u32 %v2751_v52, 16  ;;  %v804_v21 = vshrl.u32 %v2756_v11, 16  ;;  %v1091_v22 = vld [vmem:[#allocation2] sm:$0xf] }
 0x185   : > { %v755_v3 = vrot.slane %v753_v57, 7  ;;  %v780_v5 = vrot.slane %v778_v59, 7  ;;  %v807_v29 = vshll.u32 %v2756_v11, 16  ;;  %v1115_v36 = vld [vmem:[#allocation2] sm:$0xe]  ;;  %v660_v41 = vmax.f32 %v621_v1, 0.0  ;;  %v624_v44 = vpop.f32.mrf.mxu0 }
 0x186   : > { %v775_v6 = vor.u32 %v773_v56, %v772_v61  ;;  %v776_v7 = vrot.slane %v772_v61, 4  ;;  %v763_v10 = vrot.slane %v761_v62, 7  ;;  %v4003_v34 = vrot.slane %v804_v21, 7  ;;  %v1093_v45 = vld [vmem:[#allocation2 + $0xc] sm:$0xf] }
 0x187   : > { %v758_v12 = vor.u32 %v756_v58, %v755_v3  ;;  %v759_v14 = vrot.slane %v755_v3, 4  ;;  %v783_v15 = vor.u32 %v781_v60, %v780_v5  ;;  %v785_v16 = vrot.slane %v780_v5, 4  ;;  %v1116_v49 = vld [vmem:[#allocation2 + $0xc] sm:$0xe]  ;;  %v4015_v55 = vpop.f32.mrf.mxu0  ;;  %v4018_v59 = vld [vmem:[#allocation2 + $0x18] sm:$0xff]  }
 0x188   : > { %v903_v18 = vsel %vm3961_vm8, %v775_v6, %v902_v2  ;;  %v766_v19 = vor.u32 %v764_v63, %v763_v10  ;;  %v768_v20 = vrot.slane %v763_v10, 4  ;;  %v1092_v30 = vld [vmem:[#allocation2 + $0x4] sm:$0xf]  ;;  %v809_v42 = vor.u32 %v807_v29, %v4003_v34  ;;  %v909_v61 = vld [vmem:[#allocation2 + $0x3c] sm:$0xf] }
 0x189   : > { %904 = vst [vmem:[#allocation2 + $0x30] sm:$0xf] %v903_v18  ;;  %v896_v26 = vsel %vm3961_vm8, %v758_v12, %v895_v8  ;;  %v784_v27 = vsel %vm3973_vm9, %v776_v7, %v783_v15  ;;  %v907_v28 = vsel %vm3900_vm3, %v785_v16, %v906_v9  ;;  %v4001_v33 = vld [vmem:[#allocation2 + $0xc] sm:$0xff]   ;;  %v4005_v37 = vcombine.low %v1091_v22, %v1092_v30  ;;  %v3268_v39 = vld [vmem:[#allocation2 + $0x8] ss:$0 sps:$4 sm:$0x11]   ;;  %v4024_v15 = vpop.f32.mrf.mxu0 }
 0x18a   : > { %897 = vst [vmem:[#allocation2 + $0x24] sm:$0xf] %v896_v26  ;;  %905 = vst [vmem:[#allocation2 + $0x34] sm:$0xf] %v784_v27  ;;  %v767_v31 = vsel %vm3973_vm9, %v759_v14, %v766_v19  ;;  %v900_v32 = vsel %vm3900_vm3, %v768_v20, %v899_v17  ;;  %v2666_v40 = vcombine.low %v1115_v36, %v1092_v30  ;;  %2006 = vmatprep.mubr.bf16.mxu1 %v4001_v33  ;;  %v1094_v35 = vld [vmem:[#allocation2 + $0x10] sm:$0xf] }
 0x18b   : > { %908 = vst [vmem:[#allocation2 + $0x38] sm:$0x1] %v907_v28  ;;  %898 = vst [vmem:[#allocation2 + $0x28] sm:$0xf] %v767_v31  ;;  %v663_v43 = vmax.f32 %v2977_v24, 0.0  ;;  %v1350_v47 = vrot.slane %v3268_v39, 1  ;;  %v2754_v48 = vpack.c.bf16 %v660_v41, %v660_v41  ;;  %v917_v50 = vsel %vm3961_vm8, %v809_v42, %v916_v38 }
 0x18c   : > { %901 = vst [vmem:[#allocation2 + $0x2c] sm:$0x1] %v900_v32  ;;  %v1349_v46 = vrot.slane %v2666_v40, 1  ;;  %v1221_v52 = vshrl.u32 %v4005_v37, 16  ;;  %v1223_v53 = vshll.u32 %v4005_v37, 16  ;;  %v1228_v60 = vshll.u32 %v3268_v39, 16  ;;  %v2981_v39 = vpop.f32.mrf.mxu0 }
 0x18d   : > { %v2757_v51 = vpack.c.bf16 %v663_v43, %v663_v43  ;;  %v4013_v54 = vld [vmem:[#allocation2 + $0x14] ss:$0 sps:$4 sm:$0x11]   ;;  %918 = vst [vmem:[#allocation2 + $0x48] sm:$0xf] %v917_v50  ;;  %v787_v57 = vshrl.u32 %v2754_v48, 16  ;;  %v4022_v7 = vcombine.low %v1093_v45, %v1094_v35  ;;  %v2667_v11 = vcombine.low %v1116_v49, %v1094_v35 }
 0x18e   : > { %v1351_v56 = vsel %vm1348_vm11, %v1349_v46, %v1350_v47  ;;  %v790_v58 = vshll.u32 %v2754_v48, 16  ;;  %v1225_v0 = vrot.slane %v1223_v53, 1  ;;  %v661_v1 = vmax.f32 %v624_v44, 0.0  ;;  %v920_v5 = vld [vmem:[#allocation2 + $0x50] sm:$0x1]  ;;  %v3282_v35 = vld [vmem:[#allocation9 + $0x128] sm:$0xff]  }
 0x18f   : > { %2007 = vmatmul.mubr.bf16.vlgmr.msra.gmra.mxu1 %v1351_v56  ;;  %v812_v62 = vshrl.u32 %v2757_v51, 16  ;;  %v815_v63 = vshll.u32 %v2757_v51, 16  ;;  %v810_v2 = vrot.slane %v4003_v34, 4  ;;  %v789_v3 = vrot.slane %v787_v57, 7  ;;  %v3276_v12 = vld [vmem:[#allocation9 + $0x130] sm:$0xff]   ;;  %v640_v56 = vpop.f32.mrf.mxu0 }
 0x190   : > { %2014 = vmatprep.mubr.bf16.mxu1 %v4018_v59  ;;  %v1230_v6 = vrot.slane %v1228_v60, 1  ;;  %v1226_v9 = vor.u32 %v1225_v0, %v1221_v52  ;;  %v2755_v10 = vpack.c.bf16 %v661_v1, %v661_v1  ;;  %v1095_v14 = vld [vmem:[#allocation2 + $0x18] sm:$0xf]  ;;  %v1235_v18 = vshll.u32 %v4022_v7, 16  ;;  %v1096_v27 = vld [vmem:[#allocation2 + $0x1c] sm:$0xf] }
 0x191   : > { %v814_v8 = vrot.slane %v812_v62, 7  ;;  %v792_v16 = vor.u32 %v790_v58, %v789_v3  ;;  %v793_v17 = vrot.slane %v789_v3, 4  ;;  %v1240_v19 = vshll.u32 %v4013_v54, 16  ;;  %v4028_v20 = vld [vmem:[#allocation2 + $0x20] ss:$0 sps:$4 sm:$0x11]  }
 0x192   : > { %v1231_v24 = vsel %vm1219_vm10, %v1226_v9, %v1230_v6  ;;  %v795_v26 = vshrl.u32 %v2755_v10, 16  ;;  %v798_v29 = vshll.u32 %v2755_v10, 16  ;;  %v1233_v30 = vshrl.u32 %v4022_v7, 16  ;;  %v913_v40 = vld [vmem:[#allocation2 + $0x44] sm:$0x1]  ;;  %v3286_v60 = vld [vmem:[#allocation9 + $0x120] sm:$0xff]  }
 0x193   : > { %v817_v21 = vor.u32 %v815_v63, %v814_v8  ;;  %v819_v22 = vrot.slane %v814_v8, 4  ;;  %v910_v28 = vsel %vm3961_vm8, %v792_v16, %v909_v61  ;;  %1909 = vmatprep.mubr.bf16.mxu0 %v1231_v24  ;;  %v1237_v31 = vrot.slane %v1235_v18, 1  ;;  %v1117_v48 = vld [vmem:[#allocation2 + $0x18] sm:$0xe]  ;;  %v1097_v57 = vld [vmem:[#allocation2 + $0x24] sm:$0xf] }
 0x194   : > { %911 = vst [vmem:[#allocation2 + $0x3c] sm:$0xf] %v910_v28  ;;  %v797_v36 = vrot.slane %v795_v26, 7  ;;  %1910 = vmatmul.mubr.bf16.vlgmr.msra.gmra.mxu0 %v4005_v37  ;;  %v1352_v38 = vrot.slane %v2667_v11, 1  ;;  %v1242_v42 = vrot.slane %v1240_v19, 1  ;;  %v1353_v43 = vrot.slane %v4013_v54, 1 }
 0x195   : > { %v818_v32 = vsel %vm3973_vm9, %v810_v2, %v817_v21  ;;  %v921_v34 = vsel %vm3900_vm3, %v819_v22, %v920_v5  ;;  %3003 = vmatpush3.bf16.msra.mxu0 %v3945_v23  ;;  %v1238_v41 = vor.u32 %v1237_v31, %v1233_v30  ;;  %v4041_v44 = vcombine.low %v1095_v14, %v1096_v27  ;;  %v4047_v23 = vld [vmem:[#allocation2 + $0x24] sm:$0xff]   ;;  %v4059_v1 = vld [vmem:[#allocation2 + $0x2c] ss:$0 sps:$4 sm:$0x11]   ;;  %v930_v14 = vld [vmem:[#allocation2 + $0x60] sm:$0xf] }
 0x196   : > { %919 = vst [vmem:[#allocation2 + $0x4c] sm:$0xf] %v818_v32  ;;  %922 = vst [vmem:[#allocation2 + $0x50] sm:$0x1] %v921_v34  ;;  %v800_v45 = vor.u32 %v798_v29, %v797_v36  ;;  %v802_v46 = vrot.slane %v797_v36, 4  ;;  %3004 = vmatprep.subr.bf16.mxu0 %v3276_v12  ;;  %v1252_v47 = vshll.u32 %v4028_v20, 16  ;;  %v1354_v50 = vsel %vm1348_vm11, %v1352_v38, %v1353_v43 }
 0x197   : > { %v666_v37 = vmax.f32 %v4015_v55, 0.0  ;;  %v1243_v49 = vsel %vm1219_vm10, %v1238_v41, %v1242_v42  ;;  %v1245_v51 = vshrl.u32 %v4041_v44, 16  ;;  %v1247_v52 = vshll.u32 %v4041_v44, 16  ;;  %2015 = vmatmul.mubr.bf16.gmra.mxu1 %v1354_v50  ;;  %v4055_v58 = vld [vmem:[#allocation2 + $0x28] sm:$0xf]  ;;  %v3292_v28 = vld [vmem:[#allocation9 + $0x118] sm:$0xff]  }
 0x198   : > { %v801_v53 = vsel %vm3973_vm9, %v793_v17, %v800_v45  ;;  %v914_v54 = vsel %vm3900_vm3, %v802_v46, %v913_v40  ;;  %1917 = vmatprep.mubr.bf16.mxu0 %v1243_v49  ;;  %2022 = vmatprep.mubr.bf16.mxu1 %v4047_v23  ;;  %v1254_v62 = vrot.slane %v1252_v47, 1  ;;  %v2668_v63 = vcombine.low %v1117_v48, %v1096_v27  ;;  %v1118_v21 = vld [vmem:[#allocation2 + $0x24] sm:$0xe]  ;;  %v923_v26 = vld [vmem:[#allocation2 + $0x54] sm:$0xf] }
 0x199   : > { %v2760_v55 = vpack.c.bf16 %v666_v37, %v666_v37  ;;  %912 = vst [vmem:[#allocation2 + $0x40] sm:$0xf] %v801_v53  ;;  %915 = vst [vmem:[#allocation2 + $0x44] sm:$0x1] %v914_v54  ;;  %3005 = vmatpush3.bf16.msra.mxu0 %v3276_v12  ;;  %v1249_v61 = vrot.slane %v1247_v52, 1  ;;  %v664_v0 = vmax.f32 %v4024_v15, 0.0  ;;  %v4064_v17 = vcombine.low %v1097_v57, %v4055_v58 }
 0x19a   : > { %v1356_v5 = vrot.slane %v4028_v20, 1  ;;  %v667_v6 = vmax.f32 %v2981_v39, 0.0  ;;  %3006 = vmatprep.subr.bf16.mxu0 %v3282_v35  ;;  %v1355_v9 = vrot.slane %v2668_v63, 1  ;;  %v665_v11 = vmax.f32 %v640_v56, 0.0  ;;  %v4069_v31 = vld [vmem:[#allocation2 + $0x30] sm:$0xff]  }
 0x19b   : > { %v838_v2 = vshrl.u32 %v2760_v55, 16  ;;  %v841_v3 = vshll.u32 %v2760_v55, 16  ;;  %v1250_v8 = vor.u32 %v1249_v61, %v1245_v51  ;;  %v2758_v10 = vpack.c.bf16 %v664_v0, %v664_v0  ;;  %v934_v32 = vld [vmem:[#allocation2 + $0x68] sm:$0x1]  ;;  %v1099_v38 = vld [vmem:[#allocation2 + $0x30] sm:$0xf] }
 0x19c   : > { %1918 = vmatmul.mubr.bf16.gmra.mxu0 %v4022_v7  ;;  %v2761_v16 = vpack.c.bf16 %v667_v6, %v667_v6  ;;  %v1264_v20 = vshll.u32 %v4059_v1, 16  ;;  %v1357_v24 = vsel %vm1348_vm11, %v1355_v9, %v1356_v5  ;;  %v2759_v34 = vpack.c.bf16 %v665_v11, %v665_v11  ;;  %v1100_v43 = vld [vmem:[#allocation2 + $0x34] sm:$0xf]  ;;  %v4077_v48 = vld [vmem:[#allocation2 + $0x38] ss:$0 sps:$4 sm:$0x11]  }
 0x19d   : > { %v840_v12 = vrot.slane %v838_v2, 7  ;;  %v1255_v15 = vsel %vm1219_vm10, %v1250_v8, %v1254_v62  ;;  %v821_v18 = vshrl.u32 %v2758_v10, 16  ;;  %v824_v19 = vshll.u32 %v2758_v10, 16  ;;  %3007 = vmatpush3.bf16.msra.mxu0 %v3282_v35  ;;  %v3296_v52 = vld [vmem:[#allocation9 + $0x110] sm:$0xff]   ;;  %v927_v55 = vld [vmem:[#allocation2 + $0x5c] sm:$0x1] }
 0x19e   : > { %1925 = vmatprep.mubr.bf16.mxu0 %v1255_v15  ;;  %v846_v7 = vshrl.u32 %v2761_v16, 16  ;;  %v849_v27 = vshll.u32 %v2761_v16, 16  ;;  %3008 = vmatprep.subr.bf16.mxu0 %v3286_v60  ;;  %v1259_v36 = vshll.u32 %v4064_v17, 16  ;;  %v1257_v41 = vshrl.u32 %v4064_v17, 16  ;;  %v1119_v63 = vld [vmem:[#allocation2 + $0x30] sm:$0xe] }
 0x19f   : > { %v843_v22 = vor.u32 %v841_v3, %v840_v12  ;;  %v844_v29 = vrot.slane %v840_v12, 4  ;;  %v823_v30 = vrot.slane %v821_v18, 7  ;;  %2023 = vmatmul.mubr.bf16.gmra.mxu1 %v1357_v24  ;;  %v2669_v42 = vcombine.low %v1118_v21, %v4055_v58  ;;  %v1101_v3 = vld [vmem:[#allocation2 + $0x3c] sm:$0xf]  ;;  %v1103_v25 = vld [vmem:[#allocation2 + $0x48] sm:$0xf] }
 0x1a0   : > { %v848_v40 = vrot.slane %v846_v7, 7  ;;  %2030 = vmatprep.mubr.bf16.mxu1 %v4069_v31  ;;  %v829_v46 = vshrl.u32 %v2759_v34, 16  ;;  %v832_v47 = vshll.u32 %v2759_v34, 16  ;;  %v1266_v37 = vrot.slane %v1264_v20, 1  ;;  %v1102_v5 = vld [vmem:[#allocation2 + $0x40] sm:$0xf] }
 0x1a1   : > { %v931_v39 = vsel %vm3961_vm8, %v843_v22, %v930_v14  ;;  %v826_v45 = vor.u32 %v824_v19, %v823_v30  ;;  %3009 = vmatpush3.bf16.msra.mxu0 %v3286_v60  ;;  %v827_v35 = vrot.slane %v823_v30, 4  ;;  %v1261_v51 = vrot.slane %v1259_v36, 1  ;;  %v4098_v12 = vld [vmem:[#allocation2 + $0x3c] sm:$0xff]   ;;  %v3294_v16 = vld [vmem:[#allocation2 + $0x44] ss:$0 sps:$4 sm:$0x11]  }
 0x1a2   : > { %932 = vst [vmem:[#allocation2 + $0x60] sm:$0xf] %v931_v39  ;;  %v851_v49 = vor.u32 %v849_v27, %v848_v40  ;;  %v853_v50 = vrot.slane %v848_v40, 4  ;;  %3010 = vmatprep.subr.bf16.mxu0 %v3292_v28  ;;  %v831_v54 = vrot.slane %v829_v46, 7  ;;  %v1358_v56 = vrot.slane %v2669_v42, 1  ;;  %v3306_v24 = vld [vmem:[#allocation9 + $0x100] sm:$0xff]  }
 0x1a3   : > { %v924_v53 = vsel %vm3961_vm8, %v826_v45, %v923_v26  ;;  %v1359_v57 = vrot.slane %v4059_v1, 1  ;;  %v1262_v61 = vor.u32 %v1261_v51, %v1257_v41  ;;  %v4087_v62 = vcombine.low %v1099_v38, %v1100_v43  ;;  %v1104_v20 = vld [vmem:[#allocation2 + $0x4c] sm:$0xf]  ;;  %v3299_v39 = vld [vmem:[#allocation2 + $0x50] ss:$0 sps:$4 sm:$0x11]  }
 0x1a4   : > { %925 = vst [vmem:[#allocation2 + $0x54] sm:$0xf] %v924_v53  ;;  %v852_v58 = vsel %vm3973_vm9, %v844_v29, %v851_v49  ;;  %v935_v60 = vsel %vm3900_vm3, %v853_v50, %v934_v32  ;;  %1926 = vmatmul.mubr.bf16.gmra.mxu0 %v4041_v44  ;;  %v834_v0 = vor.u32 %v832_v47, %v831_v54  ;;  %v836_v2 = vrot.slane %v831_v54, 4  ;;  %v1120_v32 = vld [vmem:[#allocation2 + $0x3c] sm:$0xe]  ;;  %v4107_v41 = vld [vmem:[#allocation2 + $0x48] sm:$0xff]  }
 0x1a5   : > { %933 = vst [vmem:[#allocation2 + $0x64] sm:$0xf] %v852_v58  ;;  %936 = vst [vmem:[#allocation2 + $0x68] sm:$0x1] %v935_v60  ;;  %v1276_v1 = vshll.u32 %v4077_v48, 16  ;;  %3011 = vmatpush3.bf16.msra.mxu0 %v3292_v28  ;;  %v1267_v6 = vsel %vm1219_vm10, %v1262_v61, %v1266_v37  ;;  %v1269_v8 = vshrl.u32 %v4087_v62, 16  ;;  %v1360_v11 = vsel %vm1348_vm11, %v1358_v56, %v1359_v57 }
 0x1a6   : > { %v1271_v44 = vshll.u32 %v4087_v62, 16  ;;  %3012 = vmatprep.subr.bf16.mxu0 %v3296_v52  ;;  %v835_v9 = vsel %vm3973_vm9, %v827_v35, %v834_v0  ;;  %v928_v10 = vsel %vm3900_vm3, %v836_v2, %v927_v55  ;;  %1933 = vmatprep.mubr.bf16.mxu0 %v1267_v6  ;;  %v2670_v14 = vcombine.low %v1119_v63, %v1100_v43  ;;  %v3308_v43 = vld [vmem:[#allocation2 + $0x20] ss:$0 sps:$4 sm:$0x11]   ;;  %v1121_v54 = vld [vmem:[#allocation2 + $0x48] sm:$0xe] }
 0x1a7   : > { %926 = vst [vmem:[#allocation2 + $0x58] sm:$0xf] %v835_v9  ;;  %929 = vst [vmem:[#allocation2 + $0x5c] sm:$0x1] %v928_v10  ;;  %2031 = vmatmul.mubr.bf16.gmra.mxu1 %v1360_v11  ;;  %v1278_v18 = vrot.slane %v1276_v1, 1  ;;  %v2655_v19 = vcombine.low %v1101_v3, %v1102_v5  ;;  %v1468_v13 = vshll.u32 %v4018_v59, 16  ;;  %v2656_v34 = vcombine.low %v1103_v25, %v1104_v20 }
 0x1a8   : > { %v1273_v15 = vrot.slane %v1271_v44, 1  ;;  %2038 = vmatprep.mubr.bf16.mxu1 %v4098_v12  ;;  %v1361_v26 = vrot.slane %v2670_v14, 1  ;;  %v1362_v7 = vrot.slane %v4077_v48, 1  ;;  %v1288_v27 = vshll.u32 %v3294_v16, 16 }
 0x1a9   : > { %3013 = vmatpush3.bf16.msra.mxu0 %v3296_v52  ;;  %v1283_v22 = vshll.u32 %v2655_v19, 16  ;;  %v1281_v29 = vshrl.u32 %v2655_v19, 16  ;;  %v1466_v36 = vshrl.u32 %v4018_v59, 16  ;;  %v1470_v38 = vrot.slane %v1468_v13, 1 }
 0x1aa   : > { %v1274_v21 = vor.u32 %v1273_v15, %v1269_v8  ;;  %3014 = vmatprep.subr.bf16.mxu0 %v3302_v4  ;;  %v1363_v40 = vsel %vm1348_vm11, %v1361_v26, %v1362_v7  ;;  %v2671_v42 = vcombine.low %v1120_v32, %v1102_v5  ;;  %v1290_v45 = vrot.slane %v1288_v27, 1 }
 0x1ab   : > { %v1285_v30 = vrot.slane %v1283_v22, 1  ;;  %v1295_v46 = vshll.u32 %v2656_v34, 16  ;;  %v1105_v47 = vld [vmem:[#allocation2 + $0x54] sm:$0xf]  ;;  %v1365_v48 = vrot.slane %v3294_v16, 1  ;;  %v1293_v35 = vshrl.u32 %v2656_v34, 16 }
 0x1ac   : > { %1934 = vmatmul.mubr.bf16.gmra.mxu0 %v4064_v17  ;;  %v1279_v28 = vsel %vm1219_vm10, %v1274_v21, %v1278_v18  ;;  %v1364_v59 = vrot.slane %v2671_v42, 1  ;;  %v1471_v49 = vor.u32 %v1470_v38, %v1466_v36  ;;  %v1473_v50 = vshll.u32 %v3308_v43, 16  ;;  %v1122_v44 = vld [vmem:[#allocation2 + $0x54] sm:$0xe]  ;;  %v4119_v10 = vld [vmem:[#allocation2 + $0x60] sm:$0xff]  }
 0x1ad   : > { %1941 = vmatprep.mubr.bf16.mxu0 %v1279_v28  ;;  %3015 = vmatpush3.bf16.msra.mxu0 %v3302_v4  ;;  %v1286_v17 = vor.u32 %v1285_v30, %v1281_v29  ;;  %v1297_v52 = vrot.slane %v1295_v46, 1  ;;  %v1300_v53 = vshll.u32 %v3299_v39, 16  ;;  %v2672_v60 = vcombine.low %v1121_v54, %v1104_v20  ;;  %v3307_v18 = vld [vmem:[#allocation2 + $0x14] ss:$0 sps:$4 sm:$0x11]  }
 0x1ae   : > { %3016 = vmatprep.subr.bf16.mxu0 %v3306_v24  ;;  %v1106_v37 = vld [vmem:[#allocation2 + $0x58] sm:$0xf]  ;;  %v1475_v56 = vrot.slane %v1473_v50, 1  ;;  %v1366_v57 = vsel %vm1348_vm11, %v1364_v59, %v1365_v48  ;;  %v3304_v0 = vld [vmem:[#allocation2 + $0x5c] ss:$0 sps:$4 sm:$0x11]  }
 0x1af   : > { %2039 = vmatmul.mubr.bf16.gmra.mxu1 %v1363_v40  ;;  %v1291_v51 = vsel %vm1219_vm10, %v1286_v17, %v1290_v45  ;;  %v2657_v55 = vcombine.low %v1105_v47, %v1106_v37  ;;  %v4113_v58 = vld [vmem:[#allocation2 + $0x54] sm:$0xff]   ;;  %v1298_v63 = vor.u32 %v1297_v52, %v1293_v35  ;;  %v1302_v4 = vrot.slane %v1300_v53, 1  ;;  %v3309_v28 = vld [vmem:[#allocation2 + $0x2c] ss:$0 sps:$4 sm:$0x11]  }
 0x1b0   : > { %2046 = vmatprep.mubr.bf16.mxu1 %v4107_v41  ;;  %v1476_v61 = vsel %vm1219_vm10, %v1471_v49, %v1475_v56  ;;  %v1367_v2 = vrot.slane %v2672_v60, 1  ;;  %v1368_v1 = vrot.slane %v3299_v39, 1  ;;  %v1312_v8 = vshll.u32 %v3304_v0, 16  ;;  %v3310_v38 = vld [vmem:[#allocation2 + $0x38] ss:$0 sps:$4 sm:$0x11]  }
 0x1b1   : > { %3017 = vmatpush3.bf16.msra.mxu0 %v3306_v24  ;;  %v1303_v3 = vsel %vm1219_vm10, %v1298_v63, %v1302_v4  ;;  %v1305_v5 = vshrl.u32 %v2657_v55, 16  ;;  %v2673_v11 = vcombine.low %v1122_v44, %v1106_v37  ;;  %v1456_v14 = vshll.u32 %v4001_v33, 16  ;;  %v3311_v42 = vld [vmem:[#allocation2 + $0x44] ss:$0 sps:$4 sm:$0x11]  }
 0x1b2   : > { %v1369_v9 = vsel %vm1348_vm11, %v1367_v2, %v1368_v1  ;;  %v1314_v15 = vrot.slane %v1312_v8, 1  ;;  %v1371_v25 = vrot.slane %v3304_v0, 1  ;;  %v1461_v21 = vshll.u32 %v3307_v18, 16  ;;  %v3312_v49 = vld [vmem:[#allocation2 + $0x50] ss:$0 sps:$4 sm:$0x11]  }
 0x1b3   : > { %v1458_v13 = vrot.slane %v1456_v14, 1  ;;  %v1454_v22 = vshrl.u32 %v4001_v33, 16  ;;  %v1480_v26 = vshll.u32 %v4047_v23, 16  ;;  %v1478_v30 = vshrl.u32 %v4047_v23, 16  ;;  %v3315_v8 = vld [vmem:[#allocation11 + $0x38] sm:$0xff]   ;;  %v3316_v14 = vld [vmem:[#allocation11 + $0x30] sm:$0xff]  }
 0x1b4   : > { %1942 = vmatmul.mubr.bf16.gmra.mxu0 %v4087_v62  ;;  %v1307_v62 = vshll.u32 %v2657_v55, 16  ;;  %v1463_v27 = vrot.slane %v1461_v21, 1  ;;  %v1492_v36 = vshll.u32 %v4069_v31, 16  ;;  %v1504_v33 = vshll.u32 %v4098_v12, 16  ;;  %3034 = vmatprep.subr.bf16.mxu1 %v3315_v8  ;;  %v3320_v18 = vld [vmem:[#allocation11 + $0x10] sm:$0xff]  }
 0x1b5   : > { %1949 = vmatprep.mubr.bf16.mxu0 %v1291_v51  ;;  %v1459_v7 = vor.u32 %v1458_v13, %v1454_v22  ;;  %v1482_v32 = vrot.slane %v1480_v26, 1  ;;  %v1490_v43 = vshrl.u32 %v4069_v31, 16  ;;  %v1497_v45 = vshll.u32 %v3310_v38, 16  ;;  %v3313_v31 = vld [vmem:[#allocation2 + $0x5c] ss:$0 sps:$4 sm:$0x11]   ;;  %3035 = vmatpush3.bf16.msra.mxu1 %v3315_v8 }
 0x1b6   : > { %v1309_v6 = vrot.slane %v1307_v62, 1  ;;  %v1494_v17 = vrot.slane %v1492_v36, 1  ;;  %v1502_v23 = vshrl.u32 %v4098_v12, 16  ;;  %v1506_v47 = vrot.slane %v1504_v33, 1  ;;  %3036 = vmatprep.subr.bf16.mxu1 %v3316_v14 }
 0x1b7   : > { %2047 = vmatmul.mubr.bf16.gmra.mxu1 %v1366_v57  ;;  %v1464_v29 = vsel %vm1219_vm10, %v1459_v7, %v1463_v27  ;;  %v1483_v39 = vor.u32 %v1482_v32, %v1478_v30  ;;  %v1509_v37 = vshll.u32 %v3311_v42, 16  ;;  %v1516_v48 = vshll.u32 %v4107_v41, 16  ;;  %v3314_v62 = vld [vmem:[#allocation2 + $0x68] ss:$0 sps:$4 sm:$0x11]  }
 0x1b8   : > { %2054 = vmatprep.mubr.bf16.mxu1 %v4113_v58  ;;  %v1310_v16 = vor.u32 %v1309_v6, %v1305_v5  ;;  %v1495_v59 = vor.u32 %v1494_v17, %v1490_v43  ;;  %v1499_v35 = vrot.slane %v1497_v45, 1  ;;  %v1528_v50 = vshll.u32 %v4113_v58, 16 }
 0x1b9   : > { %v1507_v51 = vor.u32 %v1506_v47, %v1502_v23  ;;  %v1511_v52 = vrot.slane %v1509_v37, 1  ;;  %v1514_v54 = vshrl.u32 %v4107_v41, 16  ;;  %v1521_v56 = vshll.u32 %v3312_v49, 16  ;;  %3037 = vmatpush3.bf16.msra.mxu1 %v3316_v14 }
 0x1ba   : > { %v1315_v20 = vsel %vm1219_vm10, %v1310_v16, %v1314_v15  ;;  %v1500_v53 = vsel %vm1219_vm10, %v1495_v59, %v1499_v35  ;;  %v1526_v57 = vshrl.u32 %v4113_v58, 16  ;;  %v1530_v60 = vrot.slane %v1528_v50, 1  ;;  %v3317_v16 = vld [vmem:[#allocation11 + $0x28] sm:$0xff]   ;;  %v3319_v15 = vld [vmem:[#allocation11 + $0x18] sm:$0xff]  }
 0x1bb   : > { %v1512_v12 = vsel %vm1219_vm10, %v1507_v51, %v1511_v52  ;;  %v1540_v63 = vshll.u32 %v4119_v10, 16  ;;  %v1523_v0 = vrot.slane %v1521_v56, 1  ;;  %v1538_v41 = vshrl.u32 %v4119_v10, 16  ;;  %3038 = vmatprep.subr.bf16.mxu1 %v3317_v16 }
 0x1bc   : > { %1950 = vmatmul.mubr.bf16.gmra.mxu0 %v2655_v19  ;;  %v1370_v19 = vrot.slane %v2673_v11, 1  ;;  %v1531_v2 = vor.u32 %v1530_v60, %v1526_v57  ;;  %v1545_v6 = vshll.u32 %v3314_v62, 16 }
 0x1bd   : > { %1957 = vmatprep.mubr.bf16.mxu0 %v1303_v3  ;;  %v1542_v5 = vrot.slane %v1540_v63, 1  ;;  %3039 = vmatpush3.bf16.msra.mxu1 %v3317_v16 }
 0x1be   : > { %v1372_v24 = vsel %vm1348_vm11, %v1370_v19, %v1371_v25  ;;  %v3321_v19 = vld [vmem:[#allocation11 + $0x8] sm:$0xff]   ;;  %v3322_v25 = vld [vmem:[#allocation11] sm:$0xff]  }
 0x1bf   : > { %2055 = vmatmul.mubr.bf16.gmra.mxu1 %v1369_v9  ;;  %v1543_v44 = vor.u32 %v1542_v5, %v1538_v41  ;;  %v1547_v9 = vrot.slane %v1545_v6, 1 }
 0x1c0   : > { %2062 = vmatprep.mubr.bf16.mxu1 %v4119_v10  ;;  %v3318_v10 = vld [vmem:[#allocation11 + $0x20] sm:$0xff]  }
 0x1c1   : > { %v1548_v11 = vsel %vm1219_vm10, %v1543_v44, %v1547_v9  ;;  %3040 = vmatprep.subr.bf16.mxu1 %v3318_v10 }
 0x1c2   : > { %3041 = vmatpush3.bf16.msra.mxu1 %v3318_v10 }
 0x1c3   : > { %3042 = vmatprep.subr.bf16.mxu1 %v3319_v15 }
 0x1c4   : > { %1958 = vmatmul.mubr.bf16.gmra.mxu0 %v2656_v34  ;;  %v1485_v34 = vshll.u32 %v3309_v28, 16 }
 0x1c5   : > { %1965 = vmatprep.mubr.bf16.mxu0 %v1315_v20 }
 0x1c6   : > { %v1487_v40 = vrot.slane %v1485_v34, 1  ;;  %3043 = vmatpush3.bf16.msra.mxu1 %v3319_v15 }
 0x1c7   : > { %2063 = vmatmul.mubr.bf16.gmra.mxu1 %v1372_v24  ;;  %3044 = vmatprep.subr.bf16.mxu1 %v3320_v18 }
 0x1c8   : > { %v1488_v46 = vsel %vm1219_vm10, %v1483_v39, %v1487_v40 }
 0x1ca   : > { %3045 = vmatpush3.bf16.msra.mxu1 %v3320_v18 }
 0x1cb   : > { %3046 = vmatprep.subr.bf16.mxu1 %v3321_v19 }
 0x1cc   : > { %1966 = vmatmul.mubr.bf16.gmra.mxu0 %v2657_v55  ;;  %v1518_v55 = vrot.slane %v1516_v48, 1 }
 0x1cd   : > { %3018 = vmatprep.mubr.bf16.mxu0 %v1464_v29 }
 0x1ce   : > { %v1519_v4 = vor.u32 %v1518_v55, %v1514_v54  ;;  %3047 = vmatpush3.bf16.msra.mxu1 %v3321_v19 }
 0x1cf   : > { %3048 = vmatprep.subr.bf16.mxu1 %v3322_v25 }
 0x1d0   : > { %v1524_v3 = vsel %vm1219_vm10, %v1519_v4, %v1523_v0 }
 0x1d2   : > { %3049 = vmatpush3.bf16.msra.mxu1 %v3322_v25 }
 0x1d4   : > { %3019 = vmatmul.mubr.bf16.vlgmr.msra.gmra.mxu0 %v1476_v61  ;;  %v1533_v61 = vshll.u32 %v3313_v31, 16 }
 0x1d5   : > { %3022 = vmatprep.mubr.bf16.mxu0 %v1488_v46 }
 0x1d6   : > { %v1535_v1 = vrot.slane %v1533_v61, 1 }
 0x1d8   : > { %v1536_v58 = vsel %vm1219_vm10, %v1531_v2, %v1535_v1 }
 0x1dc   : > { %3023 = vmatmul.mubr.bf16.gmra.mxu0 %v1500_v53 }
 0x1dd   : > { %3026 = vmatprep.mubr.bf16.mxu0 %v1512_v12 }
 0x1e4   : > { %3027 = vmatmul.mubr.bf16.gmra.mxu0 %v1524_v3 }
 0x1e5   : > { %3030 = vmatprep.mubr.bf16.mxu0 %v1536_v58 }
 0x1ec   : > { %3031 = vmatmul.mubr.bf16.gmra.mxu0 %v1548_v11 }
 0x24f   : > { %v2870_v20 = vpop.f32.mrf.mxu1 }
 0x251   : > { %v2871_v13 = vpop.f32.mrf.mxu1 }
 0x252   : > { %v2872_v19 = vadd.f32 %v2871_v13, %v2870_v20 }
 0x253   : > { %v4145_v21 = vpop.f32.mrf.mxu1 }
 0x254   : > { %v2806_v22 = vpop.f32.mrf.mxu0 }
 0x255   : > { %v4147_v24 = vpop.f32.mrf.mxu1 }
 0x256   : > { %v2807_v26 = vpop.f32.mrf.mxu0 }
 0x257   : > { %v4149_v7 = vadd.f32 %v2807_v26, %v2806_v22  ;;  %v2876_v27 = vpop.f32.mrf.mxu1 }
 0x258   : > { %v2809_v28 = vpop.f32.mrf.mxu0 }
 0x259   : > { %v2877_v29 = vpop.f32.mrf.mxu1 }
 0x25a   : > { %v2810_v30 = vpop.f32.mrf.mxu0  ;;  %v2878_v26 = vadd.f32 %v2877_v29, %v2876_v27 }
 0x25b   : > { %v2879_v32 = vpop.f32.mrf.mxu1  ;;  %v2811_v25 = vadd.f32 %v2810_v30, %v2809_v28 }
 0x25c   : > { %v2812_v34 = vpop.f32.mrf.mxu0 }
 0x25d   : > { %v2880_v36 = vpop.f32.mrf.mxu1 }
 0x25e   : > { %v2813_v38 = vpop.f32.mrf.mxu0  ;;  %v2881_v22 = vadd.f32 %v2880_v36, %v2879_v32 }
 0x25f   : > { %v4151_v33 = vpop.f32.mrf.mxu1  ;;  %v2814_v15 = vadd.f32 %v2813_v38, %v2812_v34 }
 0x260   : > { %v2815_v39 = vpop.f32.mrf.mxu0 }
 0x261   : > { %v4153_v40 = vpop.f32.mrf.mxu1 }
 0x262   : > { %v2816_v42 = vpop.f32.mrf.mxu0  ;;  %v2884_v30 = vadd.f32 %v4153_v40, %v4151_v33 }
 0x263   : > { %v4155_v43 = vpop.f32.mrf.mxu1  ;;  %v2817_v10 = vadd.f32 %v2816_v42, %v2815_v39 }
 0x264   : > { %v2818_v17 = vpop.f32.mrf.mxu0 }
 0x265   : > { %v4157_v45 = vpop.f32.mrf.mxu1 }
 0x266   : > { %v2819_v46 = vpop.f32.mrf.mxu0 }
 0x267   : > { %v4159_v23 = vpop.f32.mrf.mxu1  ;;  %v2820_v28 = vadd.f32 %v2819_v46, %v2818_v17  ;;  %v2887_v17 = vadd.f32 %v4157_v45, %v4155_v43 }
 0x268   : > { %v2821_v47 = vpop.f32.mrf.mxu0 }
 0x269   : > { %v4161_v37 = vpop.f32.mrf.mxu1 }
 0x26a   : > { %v2822_v48 = vpop.f32.mrf.mxu0 }
 0x26b   : > { %v2891_v59 = vpop.f32.mrf.mxu1 }
 0x26c   : > { %v2824_v35 = vpop.f32.mrf.mxu0 }
 0x26d   : > { %v2892_v49 = vpop.f32.mrf.mxu1 }
 0x26e   : > { %v2825_v50 = vpop.f32.mrf.mxu0  ;;  %v2893_v36 = vadd.f32 %v2892_v49, %v2891_v59 }
 0x26f   : > { %v4163_v51 = vpop.f32.mrf.mxu1  ;;  %v2826_v32 = vadd.f32 %v2825_v50, %v2824_v35 }
 0x270   : > { %v2827_v52 = vpop.f32.mrf.mxu0 }
 0x271   : > { %v4165_v31 = vpop.f32.mrf.mxu1 }
 0x272   : > { %v2828_v53 = vpop.f32.mrf.mxu0 }
 0x273   : > { %v4169_v55 = vpop.f32.mrf.mxu1  ;;  %v2829_v27 = vadd.f32 %v2828_v53, %v2827_v52  ;;  %v2025_v52 = vadd.f32 %v2884_v30, %v2820_v28 }
 0x274   : > { %v4167_v54 = vpop.f32.mrf.mxu0 }
 0x275   : > { %v4175_v57 = vpop.f32.mrf.mxu1  ;;  %v2036_v53 = vadd.f32 %v2893_v36, %v2829_v27 }
 0x276   : > { %v4171_v56 = vpop.f32.mrf.mxu0 }
 0x277   : > { %v4181_v63 = vpop.f32.mrf.mxu1 }
 0x278   : > { %v4173_v12 = vpop.f32.mrf.mxu0 }
 0x279   : > { %v4187_v62 = vpop.f32.mrf.mxu1 }
 0x27a   : > { %v4177_v60 = vpop.f32.mrf.mxu0 }
 0x27b   : > { %v4193_v3 = vpop.f32.mrf.mxu1 }
 0x27c   : > { %v4179_v61 = vpop.f32.mrf.mxu0 }
 0x27d   : > { %v4199_v6 = vpop.f32.mrf.mxu1 }
 0x27e   : > { %v4183_v4 = vpop.f32.mrf.mxu0 }
 0x27f   : > { %v4205_v44 = vpop.f32.mrf.mxu1 }
 0x280   : > { %v4185_v0 = vpop.f32.mrf.mxu0  ;;  %4420 = vst [vmem:[#allocation30_spill] sm:$0xff] %v4205_v44  ;;  %v2020_v44 = vadd.f32 %v2881_v22, %v2817_v10  ;;  %v2835_v10 = vadd.f32 %v4177_v60, %v4173_v12 }
 0x281   : > { %v4211_v14 = vpop.f32.mrf.mxu1 }
 0x282   : > { %v4189_v2 = vpop.f32.mrf.mxu0  ;;  %4423 = vst [vmem:[#allocation33_spill] sm:$0xff] %v4211_v14 }
 0x283   : > { %v2841_v43 = vadd.f32 %v4189_v2, %v4185_v0 }
 0x284   : > { %v4191_v1 = vpop.f32.mrf.mxu0 }
 0x286   : > { %v4195_v41 = vpop.f32.mrf.mxu0 }
 0x287   : > { %4416 = vst [vmem:[#allocation26_spill] sm:$0xff] %v4195_v41  ;;  %v4428_v27 = vld [vmem:[#allocation30_spill] sm:$0xff] }
 0x288   : > { %v4197_v5 = vpop.f32.mrf.mxu0 }
 0x289   : > { %4417 = vst [vmem:[#allocation27_spill] sm:$0xff] %v4197_v5 }
 0x28a   : > { %v4201_v8 = vpop.f32.mrf.mxu0 }
 0x28b   : > { %4418 = vst [vmem:[#allocation28_spill] sm:$0xff] %v4201_v8  ;;  %v4215_v8 = vpop.f32.mrf.mxu1 }
 0x28c   : > { %v4203_v58 = vpop.f32.mrf.mxu0 }
 0x28d   : > { %4419 = vst [vmem:[#allocation29_spill] sm:$0xff] %v4203_v58  ;;  %v2875_v58 = vadd.f32 %v4147_v24, %v4145_v21  ;;  %v4220_v34 = vpop.f32.mrf.mxu1 }
 0x28e   : > { %v4207_v9 = vpop.f32.mrf.mxu0 }
 0x28f   : > { %4421 = vst [vmem:[#allocation31_spill] sm:$0xff] %v4207_v9  ;;  %v2009_v9 = vadd.f32 %v2872_v19, %v4149_v7  ;;  %v2012_v39 = vadd.f32 %v2875_v58, %v2811_v25  ;;  %v2823_v7 = vadd.f32 %v2822_v48, %v2821_v47  ;;  %v2912_v58 = vpop.f32.mrf.mxu1 }
 0x290   : > { %v4209_v11 = vpop.f32.mrf.mxu0 }
 0x291   : > { %4422 = vst [vmem:[#allocation32_spill] sm:$0xff] %v4209_v11  ;;  %v2017_v11 = vadd.f32 %v2878_v26, %v2814_v15  ;;  %v2028_v48 = vadd.f32 %v2887_v17, %v2823_v7  ;;  %v2913_v59 = vpop.f32.mrf.mxu1  ;;  %v2905_v15 = vadd.f32 %v4199_v6, %v4193_v3 }
 0x292   : > { %v4213_v16 = vpop.f32.mrf.mxu0 }
 0x293   : > { %4424 = vst [vmem:[#allocation34_spill] sm:$0xff] %v4213_v16  ;;  %v2915_v0 = vpop.f32.mrf.mxu1 }
 0x294   : > { %v3020_v18 = vpop.f32.mrf.mxu0 }
 0x295   : > { %v2114_v20 = vadd.f32 %v3020_v18, %v2017_v11  ;;  %v2838_v11 = vadd.f32 %v4183_v4, %v4179_v61  ;;  %v2052_v4 = vadd.f32 %v2905_v15, %v2841_v43  ;;  %v2916_v6 = vpop.f32.mrf.mxu1 }
 0x296   : > { %v2105_v5 = vpop.f32.mrf.mxu0 }
 0x297   : > { %v2106_v41 = vadd.f32 %v2105_v5, %v2009_v9  ;;  %v2890_v5 = vadd.f32 %v4161_v37, %v4159_v23  ;;  %v2832_v23 = vadd.f32 %v4171_v56, %v4167_v54  ;;  %v2896_v37 = vadd.f32 %v4165_v31, %v4163_v51 }
 0x298   : > { %v3021_v14 = vpop.f32.mrf.mxu0  ;;  %v2902_v56 = vadd.f32 %v4187_v62, %v4181_v63  ;;  %v2899_v51 = vadd.f32 %v4175_v57, %v4169_v55  ;;  %v4425_v63 = vld [vmem:[#allocation26_spill] sm:$0xff] }
 0x299   : > { %v2117_v16 = vadd.f32 %v3021_v14, %v2020_v44  ;;  %v2168_v38 = vmax.f32 %v2106_v41, 0.0  ;;  %v2170_v44 = vmax.f32 %v2114_v20, 0.0  ;;  %v2033_v40 = vadd.f32 %v2890_v5, %v2826_v32  ;;  %v4430_v32 = vld [vmem:[#allocation29_spill] sm:$0xff] }
 0x29a   : > { %v2108_v13 = vpop.f32.mrf.mxu0  ;;  %v2041_v61 = vadd.f32 %v2896_v37, %v2832_v23  ;;  %v2049_v22 = vadd.f32 %v2902_v56, %v2838_v11  ;;  %v2044_v3 = vadd.f32 %v2899_v51, %v2835_v10  ;;  %v2844_v62 = vadd.f32 %v4425_v63, %v4191_v1  ;;  %v4427_v28 = vld [vmem:[#allocation34_spill] sm:$0xff] }
 0x29b   : > { %v2109_v29 = vadd.f32 %v2108_v13, %v2012_v39  ;;  %v2171_v21 = vmax.f32 %v2117_v16, 0.0  ;;  %v4426_v13 = vld [vmem:[#allocation32_spill] sm:$0xff]  ;;  %v3334_v63 = vld [vmem:[%s3874_s18 + $0x10] sm:$0xff]  }
 0x29c   : > { %v3024_v24 = vpop.f32.mrf.mxu0  ;;  %v2853_v55 = vadd.f32 %v4427_v28, %v4426_v13 }
 0x29d   : > { %v2169_v42 = vmax.f32 %v2109_v29, 0.0  ;;  %v2185_v33 = vpack.c.bf16 %v2171_v21, %v2170_v44  ;;  %v2130_v49 = vadd.f32 %v3024_v24, %v2033_v40  ;;  %v4429_v29 = vld [vmem:[#allocation33_spill] sm:$0xff]  ;;  %v4431_v21 = vld [vmem:[#allocation31_spill] sm:$0xff]  ;;  %v2917_v44 = vadd.f32 %v2916_v6, %v2915_v0 }
 0x29e   : > { %v2121_v9 = vpop.f32.mrf.mxu0  ;;  %v2908_v30 = vadd.f32 %v4429_v29, %v4428_v27  ;;  %v2850_v24 = vadd.f32 %v4431_v21, %v4430_v32  ;;  %v2374_v32 = vunpack.c.h.bf16 %v3334_v63 }
 0x29f   : > { %v2184_v46 = vpack.c.bf16 %v2169_v42, %v2168_v38  ;;  %v2122_v50 = vadd.f32 %v2121_v9, %v2025_v52  ;;  %v2174_v2 = vmax.f32 %v2130_v49, 0.0  ;;  %v4432_v38 = vld [vmem:[#allocation27_spill] sm:$0xff]  ;;  %v4433_v42 = vld [vmem:[#allocation28_spill] sm:$0xff] }
 0x2a0   : > { %v3025_v35 = vpop.f32.mrf.mxu0  ;;  %v2847_v5 = vadd.f32 %v4433_v42, %v4432_v38  ;;  %v2057_v40 = vadd.f32 %v2908_v30, %v2844_v62  ;;  %v2373_v62 = vunpack.c.l.bf16 %v3334_v63 }
 0x2a1   : > { %v2133_v47 = vadd.f32 %v3025_v35, %v2036_v53  ;;  %3050 = vmatprep.mubr.bf16.mxu1 %v2184_v46  ;;  %v2172_v18 = vmax.f32 %v2122_v50, 0.0  ;;  %v2914_v46 = vadd.f32 %v2913_v59, %v2912_v58  ;;  %v2911_v53 = vadd.f32 %v4220_v34, %v4215_v8 }
 0x2a2   : > { %v2124_v41 = vpop.f32.mrf.mxu0  ;;  %3051 = vmatmul.mubr.bf16.vlgmr.msra.gmra.mxu1 %v2185_v33  ;;  %v2068_v35 = vadd.f32 %v2917_v44, %v2853_v55 }
 0x2a3   : > { %v2125_v45 = vadd.f32 %v2124_v41, %v2028_v48  ;;  %v2175_v14 = vmax.f32 %v2133_v47, 0.0  ;;  %v2065_v47 = vadd.f32 %v2914_v46, %v2850_v24  ;;  %v2060_v23 = vadd.f32 %v2911_v53, %v2847_v5 }
 0x2a4   : > { %v3028_v16 = vpop.f32.mrf.mxu0 }
 0x2a5   : > { %v2173_v54 = vmax.f32 %v2125_v45, 0.0  ;;  %v2187_v25 = vpack.c.bf16 %v2175_v14, %v2174_v2  ;;  %v2146_v39 = vadd.f32 %v3028_v16, %v2049_v22  ;;  %v3331_v16 = vld [vmem:[%s3874_s18 + $0x8] sm:$0xff]  }
 0x2a6   : > { %v2137_v19 = vpop.f32.mrf.mxu0  ;;  %v2371_v10 = vunpack.c.l.bf16 %v3331_v16  ;;  %v2372_v51 = vunpack.c.h.bf16 %v3331_v16 }
 0x2a7   : > { %v2186_v31 = vpack.c.bf16 %v2173_v54, %v2172_v18  ;;  %v2138_v60 = vadd.f32 %v2137_v19, %v2041_v61  ;;  %v2178_v1 = vmax.f32 %v2146_v39, 0.0  ;;  %v3332_v18 = vld [vmem:[%s3874_s18] sm:$0xff]  }
 0x2a8   : > { %v3029_v12 = vpop.f32.mrf.mxu0  ;;  %v2369_v54 = vunpack.c.l.bf16 %v3332_v18  ;;  %v2370_v61 = vunpack.c.h.bf16 %v3332_v18 }
 0x2a9   : > { %v2149_v26 = vadd.f32 %v3029_v12, %v2052_v4  ;;  %3054 = vmatprep.mubr.bf16.mxu1 %v2186_v31  ;;  %v2176_v9 = vmax.f32 %v2138_v60, 0.0 }
 0x2aa   : > { %v2140_v20 = vpop.f32.mrf.mxu0  ;;  %3055 = vmatmul.mubr.bf16.gmra.mxu1 %v2187_v25 }
 0x2ab   : > { %v2141_v57 = vadd.f32 %v2140_v20, %v2044_v3  ;;  %v2179_v7 = vmax.f32 %v2149_v26, 0.0  ;;  %v3333_v26 = vld [vmem:[%s3874_s18 + $0x18] sm:$0xff]  }
 0x2ac   : > { %v3032_v36 = vpop.f32.mrf.mxu0  ;;  %v2375_v3 = vunpack.c.l.bf16 %v3333_v26 }
 0x2ad   : > { %v2177_v17 = vmax.f32 %v2141_v57, 0.0  ;;  %v2189_v50 = vpack.c.bf16 %v2179_v7, %v2178_v1  ;;  %v2162_v43 = vadd.f32 %v3032_v36, %v2065_v47  ;;  %v2376_v57 = vunpack.c.h.bf16 %v3333_v26  ;;  %v3335_v36 = vld [vmem:[%s3874_s18 + $0x28] sm:$0xff]  }
 0x2ae   : > { %v2153_v52 = vpop.f32.mrf.mxu0  ;;  %v2379_v38 = vunpack.c.l.bf16 %v3335_v36  ;;  %v2380_v53 = vunpack.c.h.bf16 %v3335_v36 }
 0x2af   : > { %v2188_v33 = vpack.c.bf16 %v2177_v17, %v2176_v9  ;;  %v2154_v49 = vadd.f32 %v2153_v52, %v2057_v40  ;;  %v2182_v34 = vmax.f32 %v2162_v43, 0.0  ;;  %v3336_v9 = vld [vmem:[%s3874_s18 + $0x20] sm:$0xff]  }
 0x2b0   : > { %v3033_v48 = vpop.f32.mrf.mxu0  ;;  %v2377_v17 = vunpack.c.l.bf16 %v3336_v9 }
 0x2b1   : > { %v2165_v41 = vadd.f32 %v3033_v48, %v2068_v35  ;;  %3058 = vmatprep.mubr.bf16.mxu1 %v2188_v33  ;;  %v2180_v37 = vmax.f32 %v2154_v49, 0.0 }
 0x2b2   : > { %v2156_v58 = vpop.f32.mrf.mxu0  ;;  %3059 = vmatmul.mubr.bf16.gmra.mxu1 %v2189_v50  ;;  %v2378_v50 = vunpack.c.h.bf16 %v3336_v9 }
 0x2b3   : > { %v2157_v59 = vadd.f32 %v2156_v58, %v2060_v23  ;;  %v2183_v45 = vmax.f32 %v2165_v41, 0.0  ;;  %v3337_v41 = vld [vmem:[%s3874_s18 + $0x38] sm:$0xff]  }
 0x2b4   : > { %v2383_v23 = vunpack.c.l.bf16 %v3337_v41 }
 0x2b5   : > { %v2181_v8 = vmax.f32 %v2157_v59, 0.0  ;;  %v2191_v14 = vpack.c.bf16 %v2183_v45, %v2182_v34  ;;  %v3338_v45 = vld [vmem:[%s3874_s18 + $0x30] sm:$0xff]   ;;  %s2418_s18 = scalar_lea.sflag [#allocation5], %s3870_s16 }
 0x2b6   : > { %v2382_v18 = vunpack.c.h.bf16 %v3338_v45 }
 0x2b7   : > { %v2190_v11 = vpack.c.bf16 %v2181_v8, %v2180_v37  ;;  %v2381_v37 = vunpack.c.l.bf16 %v3338_v45 }
 0x2b9   : > { %3062 = vmatprep.mubr.bf16.mxu1 %v2190_v11 }
 0x2ba   : > { %3063 = vmatmul.mubr.bf16.gmra.mxu1 %v2191_v14  ;;  %v2384_v14 = vunpack.c.h.bf16 %v3337_v41 }
 0x362   : > { %v3052_v15 = vpop.f32.mrf.mxu1 }
 0x363   : > { %v2355_v56 = vmax.f32 %v3052_v15, 0.0 }
 0x364   : > { %v2290_v0 = vpop.f32.mrf.mxu1 }
 0x365   : > { %v2387_v2 = vadd.f32 %v2371_v10, %v2355_v56  ;;  %v2353_v19 = vmax.f32 %v2290_v0, 0.0 }
 0x366   : > { %v3053_v31 = vpop.f32.mrf.mxu1 }
 0x367   : > { %2403 = vst [vmem:[%s4259_s21 + $0x10] sm:$0xff] %v2387_v2  ;;  %v2385_v4 = vadd.f32 %v2369_v54, %v2353_v19  ;;  %v2356_v25 = vmax.f32 %v3053_v31, 0.0 }
 0x368   : > { %v2293_v22 = vpop.f32.mrf.mxu1 }
 0x369   : > { %2401 = vst [vmem:[%s4259_s21] sm:$0xff] %v2385_v4  ;;  %v2388_v12 = vadd.f32 %v2372_v51, %v2356_v25  ;;  %v2354_v60 = vmax.f32 %v2293_v22, 0.0 }
 0x36a   : > { %v3056_v6 = vpop.f32.mrf.mxu1 }
 0x36b   : > { %2404 = vst [vmem:[%s4259_s21 + $0x18] sm:$0xff] %v2388_v12  ;;  %v2386_v39 = vadd.f32 %v2370_v61, %v2354_v60  ;;  %v2359_v20 = vmax.f32 %v3056_v6, 0.0 }
 0x36c   : > { %v2306_v13 = vpop.f32.mrf.mxu1 }
 0x36d   : > { %2402 = vst [vmem:[%s4259_s21 + $0x8] sm:$0xff] %v2386_v39  ;;  %v2391_v28 = vadd.f32 %v2375_v3, %v2359_v20  ;;  %v2357_v55 = vmax.f32 %v2306_v13, 0.0 }
 0x36e   : > { %v3057_v27 = vpop.f32.mrf.mxu1 }
 0x36f   : > { %2407 = vst [vmem:[%s4259_s21 + $0x30] sm:$0xff] %v2391_v28  ;;  %v2389_v29 = vadd.f32 %v2373_v62, %v2357_v55  ;;  %v2360_v30 = vmax.f32 %v3057_v27, 0.0 }
 0x370   : > { %v2309_v21 = vpop.f32.mrf.mxu1 }
 0x371   : > { %2405 = vst [vmem:[%s4259_s21 + $0x20] sm:$0xff] %v2389_v29  ;;  %v2392_v24 = vadd.f32 %v2376_v57, %v2360_v30  ;;  %v2358_v7 = vmax.f32 %v2309_v21, 0.0 }
 0x372   : > { %v3060_v42 = vpop.f32.mrf.mxu1 }
 0x373   : > { %2408 = vst [vmem:[%s4259_s21 + $0x38] sm:$0xff] %v2392_v24  ;;  %v2390_v5 = vadd.f32 %v2374_v32, %v2358_v7  ;;  %v2363_v44 = vmax.f32 %v3060_v42, 0.0 }
 0x374   : > { %v2322_v46 = vpop.f32.mrf.mxu1 }
 0x375   : > { %2406 = vst [vmem:[%s4259_s21 + $0x28] sm:$0xff] %v2390_v5  ;;  %v2395_v1 = vadd.f32 %v2379_v38, %v2363_v44  ;;  %v2361_v52 = vmax.f32 %v2322_v46, 0.0 }
 0x376   : > { %v3061_v33 = vpop.f32.mrf.mxu1 }
 0x377   : > { %2411 = vst [vmem:[%s4259_s21 + $0x50] sm:$0xff] %v2395_v1  ;;  %v2393_v40 = vadd.f32 %v2377_v17, %v2361_v52  ;;  %v2364_v35 = vmax.f32 %v3061_v33, 0.0 }
 0x378   : > { %v2325_v47 = vpop.f32.mrf.mxu1 }
 0x379   : > { %2409 = vst [vmem:[%s4259_s21 + $0x40] sm:$0xff] %v2393_v40  ;;  %v2396_v48 = vadd.f32 %v2380_v53, %v2364_v35  ;;  %v2362_v49 = vmax.f32 %v2325_v47, 0.0 }
 0x37a   : > { %v3064_v43 = vpop.f32.mrf.mxu1 }
 0x37b   : > { %2412 = vst [vmem:[%s4259_s21 + $0x58] sm:$0xff] %v2396_v48  ;;  %v2394_v58 = vadd.f32 %v2378_v50, %v2362_v49  ;;  %v2367_v59 = vmax.f32 %v3064_v43, 0.0 }
 0x37c   : > { %v2338_v8 = vpop.f32.mrf.mxu1 }
 0x37d   : > { %2410 = vst [vmem:[%s4259_s21 + $0x48] sm:$0xff] %v2394_v58  ;;  %v2399_v34 = vadd.f32 %v2383_v23, %v2367_v59  ;;  %v2365_v11 = vmax.f32 %v2338_v8, 0.0 }
 0x37e   : > { %v3065_v16 = vpop.f32.mrf.mxu1 }
 0x37f   : > { %2415 = vst [vmem:[%s4259_s21 + $0x70] sm:$0xff] %v2399_v34  ;;  %v2397_v10 = vadd.f32 %v2381_v37, %v2365_v11  ;;  %v2368_v15 = vmax.f32 %v3065_v16, 0.0 }
 0x380   : > { %v2341_v54 = vpop.f32.mrf.mxu1 }
 0x381   : > { %2413 = vst [vmem:[%s4259_s21 + $0x60] sm:$0xff] %v2397_v10  ;;  %v2400_v56 = vadd.f32 %v2384_v14, %v2368_v15  ;;  %v2366_v0 = vmax.f32 %v2341_v54, 0.0 }
 0x383   : > { %2416 = vst [vmem:[%s4259_s21 + $0x78] sm:$0xff] %v2400_v56  ;;  %v2398_v2 = vadd.f32 %v2382_v18, %v2366_v0 }
 0x385   : > { %2414 = vst [vmem:[%s4259_s21 + $0x68] sm:$0xff] %v2398_v2 }
 0x386   : > { %3486 = shalt.err (!%p3483_p0)
}
 0x387   : > { %s3487_s15 = scalar_lea.hbm %s4290_s13, 2048  ;;  %s3491_s7 = scalar_lea.hbm %s4436_s8, 8192 }
 0x388   : > { %p3488_p2 = scmp.ne.s32.totalorder %s4290_s13, %s3487_s15  ;;  %p3492_p10 = scmp.lt.s32.totalorder %s4290_s13, %s4436_s8 }
 0x389   : > { %p3493_p5 = scmp.lt.s32.totalorder %s3491_s7, %s3487_s15 }
 0x38a   : > { %p3489_p8 = pnand %p3488_p2, %p3807_p9 }
 0x38b   : > { %p3494_p6 = por %p3493_p5, %p3492_p10 }
 0x38c   : > { %p3490_p4 = pneg %p3489_p8 }
 0x38e   : > { %p3495_p7 = pnand %p3494_p6, %p3490_p4 }
 0x390   : > { %3498 = shalt.err (!%p3495_p7)
}
 0x391   : > { %s3617_s2 = smov 128   ;;  %s3618_s5 = smov 8  }
 0x392   : > { %3082 = dma.vmem_to_hbm [thread:$0]  (%p3807_p9), %s4284_s26, 2048, %s4290_s13, %s2418_s18, %s3617_s2, %s3617_s2, %s3618_s5  }
 0x393 PF: > { %s4437_s25 = sld [smem:[#allocation18_spill]]  ;;  %p3112_p13 = scmp.ge.s32.totalorder %s3605_s28, 2 }
 0x394   : > { %s4438_s14 = sld [smem:[#allocation21_spill]] }
 0x399   : > { %s2449_s10 = sand.u32 1, %s4437_s25  }
 0x39a   : > { %p4439_p1 = scmp.ne.s32.totalorder %s4438_s14, 0  ;;  %s2450_s3 = scalar_lea.sflag [#allocation5], %s2449_s10 }
 0x39c   : > { %p3102_p12 = pnand %p3112_p13, %p4439_p1 }
 0x39e   : > { %p3103_p11 = pneg %p3102_p12 }
 0x3a0   : > { %3560 = dma.done.wait (%p3103_p11), %s2450_s3, 2048  }
 0x3a1   : > { %3562 = vsyncadd (%p3103_p11), %s2450_s3, 4294965248  ;;  %s25_s28 = sadd.s32 1, %s3605_s28   ;;  %s4440_s16 = sld [smem:[#allocation25_spill]] }
 0x3a2   : > { %p22_p3 = scmp.ge.s32.totalorder %s25_s28, 6   ;;  %s4441_s24 = sld [smem:[#allocation20_spill]] }
 0x3a3   : > { %s4442_s26 = sld [smem:[#allocation22_spill]]  ;;  %s4444_s18 = smov %s3569_s19 }
 0x3a4   : > { %s4443_s13 = sld [smem:[#allocation23_spill]]  ;;  %s4445_s19 = smov %s3573_s20 }
 0x3a5   : > { %s4446_s20 = smov %s3843_s30  ;;  %s4447_s21 = smov %s3581_s22 }
 0x3a6   : > { %s4448_s22 = smov %s3585_s23  ;;  %s4450_s25 = smov %s3601_s27 }
 0x3a7   : > { %s4449_s23 = smov %s4440_s16  ;;  %24 = sbr.rel (!%p22_p3) target bundleno = 17 (0x11), region = 111 }
 0x3aa   : > { %s4451_s27 = smov %s4443_s13 }
 0x3ac   :  { %2455 = vsyncpa [#allocation4], 1 }
 0x3ad   :  { %2457 = vsyncpa [#allocation4 + $0x1], 1 }
 0x3ae   :  { %2458 = vsyncpa [#allocation7], 1 }
 0x3af   :  { %2460 = vsyncpa [#allocation7 + $0x1], 1 }
 0x3b0   :  { %2461 = vsyncpa [#allocation10], 1 }
 0x3b1   :  { %2462 = vsyncpa [#allocation5], 1 }
 0x3b2   :  { %2464 = vsyncpa [#allocation5 + $0x1], 1 }

</bundles_post_ra>
